<compile_context>
chip_gen: v7x
topology: tpu7x:2x2x1
jax: 0.10.0
libtpu: 0.0.40
codegen_flags: <defaults>
</compile_context>

<pallas_src>
import jax
import jax.numpy as jnp
import numpy as np
from jax.experimental import pallas as pl
from jax.experimental.pallas import tpu as pltpu


def down_kernel(xq_ref, w1_ref, t1_ref, w2_ref, t2_ref, o_ref,
                p1_ref, pad2_ref, p2_ref):
    B, Hpp, Wpp, C4 = xq_ref.shape          # (B, Hp+2, Wp+2, 4*Cin), spatially pre-padded
    Cin = C4 // 4
    Hp, Wp = Hpp - 2, Wpp - 2
    R = B * Hp * Wp                         # flattened output pixels = MXU M dimension
    Cmid = w1_ref.shape[1]
    Cout = w2_ref.shape[1]

    # --- MaxPool2d(2): max over the four quadrant channel-groups (pad stays 0) ---
    xq = xq_ref[...]
    pooled = jnp.maximum(
        jnp.maximum(xq[..., 0 * Cin:1 * Cin], xq[..., 1 * Cin:2 * Cin]),
        jnp.maximum(xq[..., 2 * Cin:3 * Cin], xq[..., 3 * Cin:4 * Cin]))
    # pooled: (B, Hp+2, Wp+2, Cin), already zero-padded for conv1.

    # --- conv1: im2col patches -> single MXU matmul, then BN shift + ReLU (f32) ---
    for ky in range(3):
        for kx in range(3):
            k = ky * 3 + kx
            # layout-preserving leading-dim collapse (last dim unchanged, Wp % 8 == 0)
            piece = pooled[:, ky:ky + Hp, kx:kx + Wp, :].reshape(R, Cin)
            p1_ref[:, k * Cin:(k + 1) * Cin] = piece
    h1 = jnp.dot(p1_ref[...].astype(jnp.bfloat16), w1_ref[...],
                 preferred_element_type=jnp.float32)          # (R, Cmid), f32 accumulate
    h1 = jnp.maximum(h1 + t1_ref[...], 0.0)

    # --- zero-pad h1 spatially in a VMEM scratch (static interior write) ---
    pad2_ref[...] = jnp.zeros_like(pad2_ref)
    pad2_ref[:, 1:Hp + 1, 1:Wp + 1, :] = h1.reshape(B, Hp, Wp, Cmid)

    # --- conv2: im2col patches -> single MXU matmul, then BN shift + ReLU (f32) ---
    for ky in range(3):
        for kx in range(3):
            k = ky * 3 + kx
            piece = pad2_ref[:, ky:ky + Hp, kx:kx + Wp, :].reshape(R, Cmid)
            p2_ref[:, k * Cmid:(k + 1) * Cmid] = piece
    h2 = jnp.dot(p2_ref[...].astype(jnp.bfloat16), w2_ref[...],
                 preferred_element_type=jnp.float32)          # (R, Cout)
    h2 = jnp.maximum(h2 + t2_ref[...], 0.0)

    # --- lane-dense store: (Cout, R) with R = B*Hp*Wp on the 128-lane axis ---
    o_ref[...] = h2.T.astype(o_ref.dtype)


def down_forward(x_nchw, w1_oihw, g1, b1, m1, v1, w2_oihw, g2, b2, m2, v2, eps=1e-5):
    B, Cin, H, W = x_nchw.shape
    Hp, Wp = H // 2, W // 2
    Cmid = w1_oihw.shape[0]
    Cout = w2_oihw.shape[0]
    R = B * Hp * Wp

    # Pack the four 2x2-pool quadrants into channels (one contiguous array -> one DMA),
    # and zero-pad spatially by 1 so the kernel needs no conv1 padding step.
    x = jnp.transpose(x_nchw, (0, 2, 3, 1)).astype(jnp.float32)            # NHWC
    xq = x.reshape(B, Hp, 2, Wp, 2, Cin).transpose(0, 1, 3, 2, 4, 5)        # (B,Hp,Wp,2,2,Cin)
    xq = xq.reshape(B, Hp, Wp, 4 * Cin)
    xq = jnp.pad(xq, ((0, 0), (1, 1), (1, 1), (0, 0)))                      # (B,Hp+2,Wp+2,4Cin)

    # Fold eval-mode BN scale into the conv weights (HWIO); keep the shift separate.
    inv1 = g1 / jnp.sqrt(v1 + eps)
    inv2 = g2 / jnp.sqrt(v2 + eps)
    w1 = jnp.transpose(w1_oihw, (2, 3, 1, 0)).astype(jnp.float32) * inv1    # (3,3,Cin,Cmid)
    w2 = jnp.transpose(w2_oihw, (2, 3, 1, 0)).astype(jnp.float32) * inv2    # (3,3,Cmid,Cout)
    w1 = w1.reshape(9 * Cin, Cmid).astype(jnp.bfloat16)    # im2col weight, bf16 MXU operand
    w2 = w2.reshape(9 * Cmid, Cout).astype(jnp.bfloat16)
    t1 = (b1 - m1 * inv1).reshape(1, Cmid).astype(jnp.float32)
    t2 = (b2 - m2 * inv2).reshape(1, Cout).astype(jnp.float32)

    out_cr = pl.pallas_call(
        down_kernel,
        out_shape=jax.ShapeDtypeStruct((Cout, R), jnp.float32),
        grid_spec=pltpu.PrefetchScalarGridSpec(
            num_scalar_prefetch=0,
            grid=(1,),   # whole batch in one program: rows = B*Hp*Wp feed the MXU M dim
            in_specs=[
                pl.BlockSpec((B, Hp + 2, Wp + 2, 4 * Cin), lambda i: (0, 0, 0, 0)),
                pl.BlockSpec((9 * Cin, Cmid), lambda i: (0, 0)),
                pl.BlockSpec((1, Cmid), lambda i: (0, 0)),
                pl.BlockSpec((9 * Cmid, Cout), lambda i: (0, 0)),
                pl.BlockSpec((1, Cout), lambda i: (0, 0)),
            ],
            out_specs=pl.BlockSpec((Cout, R), lambda i: (0, 0)),
            scratch_shapes=[
                pltpu.VMEM((R, 9 * Cin), jnp.float32),                # conv1 im2col patches
                pltpu.VMEM((B, Hp + 2, Wp + 2, Cmid), jnp.float32),   # zero-padded h1
                pltpu.VMEM((R, 9 * Cmid), jnp.float32),               # conv2 im2col patches
            ],
        ),
        compiler_params=pltpu.CompilerParams(dimension_semantics=("arbitrary",)),
    )(xq, w1, t1, w2, t2)

    # (Cout, B*Hp*Wp) -> NCHW
    return out_cr.reshape(Cout, B, Hp, Wp).transpose(1, 0, 2, 3)


def ref_forward(x_nchw, w1_oihw, g1, b1, m1, v1, w2_oihw, g2, b2, m2, v2, eps=1e-5):
    """Pure-JAX/XLA reference of the PyTorch forward (eval-mode BN)."""
    y = jax.lax.reduce_window(x_nchw, -jnp.inf, jax.lax.max,
                              window_dimensions=(1, 1, 2, 2),
                              window_strides=(1, 1, 2, 2),
                              padding="VALID")

    def block(y, w, g, b, m, v):
        z = jax.lax.conv_general_dilated(
            y, w, window_strides=(1, 1), padding="SAME",
            dimension_numbers=("NCHW", "OIHW", "NCHW"))
        z = (z - m[None, :, None, None]) / jnp.sqrt(v[None, :, None, None] + eps)
        z = z * g[None, :, None, None] + b[None, :, None, None]
        return jnp.maximum(z, 0.0)

    y = block(y, w1_oihw, g1, b1, m1, v1)
    y = block(y, w2_oihw, g2, b2, m2, v2)
    return y


if __name__ == "__main__":
    B, Cin, H, W = 2, 4, 16, 16
    Cout = 8          # Down(in_channels=4, out_channels=8); mid_channels == out_channels
    Cmid = Cout

    key = jax.random.PRNGKey(0)
    keys = jax.random.split(key, 11)

    x = jax.random.normal(keys[0], (B, Cin, H, W), jnp.float32)

    # Conv weights (PyTorch OIHW layout), no bias.
    w1 = jax.random.normal(keys[1], (Cmid, Cin, 3, 3), jnp.float32) * 0.1
    w2 = jax.random.normal(keys[2], (Cout, Cmid, 3, 3), jnp.float32) * 0.1

    # BatchNorm parameters / running stats (deterministic, non-trivial).
    g1 = jax.random.uniform(keys[3], (Cmid,), jnp.float32, 0.5, 1.5)
    b1 = jax.random.normal(keys[4], (Cmid,), jnp.float32) * 0.1
    m1 = jax.random.normal(keys[5], (Cmid,), jnp.float32) * 0.1
    v1 = jax.random.uniform(keys[6], (Cmid,), jnp.float32, 0.5, 1.5)
    g2 = jax.random.uniform(keys[7], (Cout,), jnp.float32, 0.5, 1.5)
    b2 = jax.random.normal(keys[8], (Cout,), jnp.float32) * 0.1
    m2 = jax.random.normal(keys[9], (Cout,), jnp.float32) * 0.1
    v2 = jax.random.uniform(keys[10], (Cout,), jnp.float32, 0.5, 1.5)

    out = down_forward(x, w1, g1, b1, m1, v1, w2, g2, b2, m2, v2)
    out = jax.block_until_ready(out)

    ref = ref_forward(x, w1, g1, b1, m1, v1, w2, g2, b2, m2, v2)
    ref = jax.block_until_ready(ref)

    assert out.shape == (B, Cout, H // 2, W // 2)
    # bf16 MXU operands (f32 accumulation) -> slightly relaxed tolerance vs the f32 reference.
    np.testing.assert_allclose(np.asarray(out), np.asarray(ref), rtol=2e-2, atol=2e-2)

    print("KERNEL_OK")
</pallas_src>

<mosaic_0001>
module attributes {stable_mosaic.version = 11 : i64} {
  func.func @down_kernel(%arg0: i32, %arg1: memref<2x10x10x16xf32, #tpu.memory_space<vmem>>, %arg2: memref<36x8xbf16, #tpu.memory_space<vmem>>, %arg3: memref<1x8xf32, #tpu.memory_space<vmem>>, %arg4: memref<72x8xbf16, #tpu.memory_space<vmem>>, %arg5: memref<1x8xf32, #tpu.memory_space<vmem>>, %arg6: memref<8x128xf32, #tpu.memory_space<vmem>>, %arg7: memref<128x36xf32, #tpu.memory_space<vmem>>, %arg8: memref<2x10x10x8xf32, #tpu.memory_space<vmem>>, %arg9: memref<128x72xf32, #tpu.memory_space<vmem>>) attributes {dimension_semantics = [#tpu.dimension_semantics<arbitrary>], iteration_bounds = array<i64: 1>, scalar_prefetch = 0 : i64, scratch_operands = 3 : i64, tpu.core_type = #tpu.core_type<tc>, window_params = [{pipeline_mode = #tpu.pipeline_mode<synchronous>, transform_indices = @transform_0, window_bounds = array<i64: 2, 10, 10, 16>}, {pipeline_mode = #tpu.pipeline_mode<synchronous>, transform_indices = @transform_1, window_bounds = array<i64: 36, 8>}, {pipeline_mode = #tpu.pipeline_mode<synchronous>, transform_indices = @transform_2, window_bounds = array<i64: 1, 8>}, {pipeline_mode = #tpu.pipeline_mode<synchronous>, transform_indices = @transform_3, window_bounds = array<i64: 72, 8>}, {pipeline_mode = #tpu.pipeline_mode<synchronous>, transform_indices = @transform_4, window_bounds = array<i64: 1, 8>}, {pipeline_mode = #tpu.pipeline_mode<synchronous>, transform_indices = @transform_5, window_bounds = array<i64: 8, 128>}]} {
    %c0 = arith.constant 0 : index
    %c0_0 = arith.constant 0 : index
    %c0_1 = arith.constant 0 : index
    %c0_2 = arith.constant 0 : index
    %0 = vector.load %arg1[%c0, %c0_0, %c0_1, %c0_2] : memref<2x10x10x16xf32, #tpu.memory_space<vmem>>, vector<2x10x10x16xf32>
    %1 = vector.extract_strided_slice %0 {offsets = [0, 0, 0, 0], sizes = [2, 10, 10, 4], strides = [1, 1, 1, 1]} : vector<2x10x10x16xf32> to vector<2x10x10x4xf32>
    %2 = vector.extract_strided_slice %0 {offsets = [0, 0, 0, 4], sizes = [2, 10, 10, 4], strides = [1, 1, 1, 1]} : vector<2x10x10x16xf32> to vector<2x10x10x4xf32>
    %3 = arith.maximumf %1, %2 : vector<2x10x10x4xf32>
    %4 = vector.extract_strided_slice %0 {offsets = [0, 0, 0, 8], sizes = [2, 10, 10, 4], strides = [1, 1, 1, 1]} : vector<2x10x10x16xf32> to vector<2x10x10x4xf32>
    %5 = vector.extract_strided_slice %0 {offsets = [0, 0, 0, 12], sizes = [2, 10, 10, 4], strides = [1, 1, 1, 1]} : vector<2x10x10x16xf32> to vector<2x10x10x4xf32>
    %6 = arith.maximumf %4, %5 : vector<2x10x10x4xf32>
    %7 = arith.maximumf %3, %6 : vector<2x10x10x4xf32>
    %8 = vector.extract_strided_slice %7 {offsets = [0, 0, 0, 0], sizes = [2, 8, 8, 4], strides = [1, 1, 1, 1]} : vector<2x10x10x4xf32> to vector<2x8x8x4xf32>
    %9 = vector.shape_cast %8 : vector<2x8x8x4xf32> to vector<128x4xf32>
    %c0_3 = arith.constant 0 : index
    %c0_4 = arith.constant 0 : index
    %10 = vector.load %arg7[%c0_3, %c0_4] : memref<128x36xf32, #tpu.memory_space<vmem>>, vector<128x4xf32>
    tpu.vector_store %arg7[%c0_3, %c0_4], %9 {strides = array<i32>} : memref<128x36xf32, #tpu.memory_space<vmem>>, vector<128x4xf32>,
    %11 = vector.extract_strided_slice %7 {offsets = [0, 0, 1, 0], sizes = [2, 8, 8, 4], strides = [1, 1, 1, 1]} : vector<2x10x10x4xf32> to vector<2x8x8x4xf32>
    %12 = vector.shape_cast %11 : vector<2x8x8x4xf32> to vector<128x4xf32>
    %c0_5 = arith.constant 0 : index
    %c4 = arith.constant 4 : index
    %13 = vector.load %arg7[%c0_5, %c4] : memref<128x36xf32, #tpu.memory_space<vmem>>, vector<128x4xf32>
    tpu.vector_store %arg7[%c0_5, %c4], %12 {strides = array<i32>} : memref<128x36xf32, #tpu.memory_space<vmem>>, vector<128x4xf32>,
    %14 = vector.extract_strided_slice %7 {offsets = [0, 0, 2, 0], sizes = [2, 8, 8, 4], strides = [1, 1, 1, 1]} : vector<2x10x10x4xf32> to vector<2x8x8x4xf32>
    %15 = vector.shape_cast %14 : vector<2x8x8x4xf32> to vector<128x4xf32>
    %c0_6 = arith.constant 0 : index
    %c8 = arith.constant 8 : index
    %16 = vector.load %arg7[%c0_6, %c8] : memref<128x36xf32, #tpu.memory_space<vmem>>, vector<128x4xf32>
    tpu.vector_store %arg7[%c0_6, %c8], %15 {strides = array<i32>} : memref<128x36xf32, #tpu.memory_space<vmem>>, vector<128x4xf32>,
    %17 = vector.extract_strided_slice %7 {offsets = [0, 1, 0, 0], sizes = [2, 8, 8, 4], strides = [1, 1, 1, 1]} : vector<2x10x10x4xf32> to vector<2x8x8x4xf32>
    %18 = vector.shape_cast %17 : vector<2x8x8x4xf32> to vector<128x4xf32>
    %c0_7 = arith.constant 0 : index
    %c12 = arith.constant 12 : index
    %19 = vector.load %arg7[%c0_7, %c12] : memref<128x36xf32, #tpu.memory_space<vmem>>, vector<128x4xf32>
    tpu.vector_store %arg7[%c0_7, %c12], %18 {strides = array<i32>} : memref<128x36xf32, #tpu.memory_space<vmem>>, vector<128x4xf32>,
    %20 = vector.extract_strided_slice %7 {offsets = [0, 1, 1, 0], sizes = [2, 8, 8, 4], strides = [1, 1, 1, 1]} : vector<2x10x10x4xf32> to vector<2x8x8x4xf32>
    %21 = vector.shape_cast %20 : vector<2x8x8x4xf32> to vector<128x4xf32>
    %c0_8 = arith.constant 0 : index
    %c16 = arith.constant 16 : index
    %22 = vector.load %arg7[%c0_8, %c16] : memref<128x36xf32, #tpu.memory_space<vmem>>, vector<128x4xf32>
    tpu.vector_store %arg7[%c0_8, %c16], %21 {strides = array<i32>} : memref<128x36xf32, #tpu.memory_space<vmem>>, vector<128x4xf32>,
    %23 = vector.extract_strided_slice %7 {offsets = [0, 1, 2, 0], sizes = [2, 8, 8, 4], strides = [1, 1, 1, 1]} : vector<2x10x10x4xf32> to vector<2x8x8x4xf32>
    %24 = vector.shape_cast %23 : vector<2x8x8x4xf32> to vector<128x4xf32>
    %c0_9 = arith.constant 0 : index
    %c20 = arith.constant 20 : index
    %25 = vector.load %arg7[%c0_9, %c20] : memref<128x36xf32, #tpu.memory_space<vmem>>, vector<128x4xf32>
    tpu.vector_store %arg7[%c0_9, %c20], %24 {strides = array<i32>} : memref<128x36xf32, #tpu.memory_space<vmem>>, vector<128x4xf32>,
    %26 = vector.extract_strided_slice %7 {offsets = [0, 2, 0, 0], sizes = [2, 8, 8, 4], strides = [1, 1, 1, 1]} : vector<2x10x10x4xf32> to vector<2x8x8x4xf32>
    %27 = vector.shape_cast %26 : vector<2x8x8x4xf32> to vector<128x4xf32>
    %c0_10 = arith.constant 0 : index
    %c24 = arith.constant 24 : index
    %28 = vector.load %arg7[%c0_10, %c24] : memref<128x36xf32, #tpu.memory_space<vmem>>, vector<128x4xf32>
    tpu.vector_store %arg7[%c0_10, %c24], %27 {strides = array<i32>} : memref<128x36xf32, #tpu.memory_space<vmem>>, vector<128x4xf32>,
    %29 = vector.extract_strided_slice %7 {offsets = [0, 2, 1, 0], sizes = [2, 8, 8, 4], strides = [1, 1, 1, 1]} : vector<2x10x10x4xf32> to vector<2x8x8x4xf32>
    %30 = vector.shape_cast %29 : vector<2x8x8x4xf32> to vector<128x4xf32>
    %c0_11 = arith.constant 0 : index
    %c28 = arith.constant 28 : index
    %31 = vector.load %arg7[%c0_11, %c28] : memref<128x36xf32, #tpu.memory_space<vmem>>, vector<128x4xf32>
    tpu.vector_store %arg7[%c0_11, %c28], %30 {strides = array<i32>} : memref<128x36xf32, #tpu.memory_space<vmem>>, vector<128x4xf32>,
    %32 = vector.extract_strided_slice %7 {offsets = [0, 2, 2, 0], sizes = [2, 8, 8, 4], strides = [1, 1, 1, 1]} : vector<2x10x10x4xf32> to vector<2x8x8x4xf32>
    %33 = vector.shape_cast %32 : vector<2x8x8x4xf32> to vector<128x4xf32>
    %c0_12 = arith.constant 0 : index
    %c32 = arith.constant 32 : index
    %34 = vector.load %arg7[%c0_12, %c32] : memref<128x36xf32, #tpu.memory_space<vmem>>, vector<128x4xf32>
    tpu.vector_store %arg7[%c0_12, %c32], %33 {strides = array<i32>} : memref<128x36xf32, #tpu.memory_space<vmem>>, vector<128x4xf32>,
    %c0_13 = arith.constant 0 : index
    %c0_14 = arith.constant 0 : index
    %35 = vector.load %arg7[%c0_13, %c0_14] : memref<128x36xf32, #tpu.memory_space<vmem>>, vector<128x36xf32>
    %36 = arith.truncf %35 : vector<128x36xf32> to vector<128x36xbf16>
    %c0_15 = arith.constant 0 : index
    %c0_16 = arith.constant 0 : index
    %37 = vector.load %arg2[%c0_15, %c0_16] : memref<36x8xbf16, #tpu.memory_space<vmem>>, vector<36x8xbf16>
    %cst = arith.constant dense<0.000000e+00> : vector<128x8xf32>
    %38 = tpu.matmul %36, %37, %cst {dimension_numbers = #tpu.dot_dimension_numbers<[1], [0], [0], [1], [0, 0, 1, 1], [], []>} : vector<128x36xbf16>, vector<36x8xbf16>, vector<128x8xf32> -> vector<128x8xf32>
    %c0_17 = arith.constant 0 : index
    %c0_18 = arith.constant 0 : index
    %39 = vector.load %arg3[%c0_17, %c0_18] : memref<1x8xf32, #tpu.memory_space<vmem>>, vector<1x8xf32>
    %40 = vector.broadcast %39 : vector<1x8xf32> to vector<128x8xf32>
    %41 = arith.addf %38, %40 : vector<128x8xf32>
    %cst_19 = arith.constant 0.000000e+00 : f32
    %42 = vector.broadcast %cst_19 : f32 to vector<128x8xf32>
    %43 = arith.maximumf %41, %42 : vector<128x8xf32>
    %cst_20 = arith.constant 0.000000e+00 : f32
    %44 = vector.broadcast %cst_20 : f32 to vector<2x10x10x8xf32>
    %c0_21 = arith.constant 0 : index
    %c0_22 = arith.constant 0 : index
    %c0_23 = arith.constant 0 : index
    %c0_24 = arith.constant 0 : index
    %45 = vector.load %arg8[%c0_21, %c0_22, %c0_23, %c0_24] : memref<2x10x10x8xf32, #tpu.memory_space<vmem>>, vector<2x10x10x8xf32>
    tpu.vector_store %arg8[%c0_21, %c0_22, %c0_23, %c0_24], %44 {strides = array<i32>} : memref<2x10x10x8xf32, #tpu.memory_space<vmem>>, vector<2x10x10x8xf32>,
    %46 = vector.shape_cast %43 : vector<128x8xf32> to vector<2x8x8x8xf32>
    %c0_25 = arith.constant 0 : index
    %c1 = arith.constant 1 : index
    %c1_26 = arith.constant 1 : index
    %c0_27 = arith.constant 0 : index
    %47 = vector.load %arg8[%c0_25, %c1, %c1_26, %c0_27] : memref<2x10x10x8xf32, #tpu.memory_space<vmem>>, vector<2x8x8x8xf32>
    tpu.vector_store %arg8[%c0_25, %c1, %c1_26, %c0_27], %46 {strides = array<i32>} : memref<2x10x10x8xf32, #tpu.memory_space<vmem>>, vector<2x8x8x8xf32>,
    %c0_28 = arith.constant 0 : index
    %c0_29 = arith.constant 0 : index
    %c0_30 = arith.constant 0 : index
    %c0_31 = arith.constant 0 : index
    %48 = vector.load %arg8[%c0_28, %c0_29, %c0_30, %c0_31] : memref<2x10x10x8xf32, #tpu.memory_space<vmem>>, vector<2x8x8x8xf32>
    %49 = vector.shape_cast %48 : vector<2x8x8x8xf32> to vector<128x8xf32>
    %c0_32 = arith.constant 0 : index
    %c0_33 = arith.constant 0 : index
    %50 = vector.load %arg9[%c0_32, %c0_33] : memref<128x72xf32, #tpu.memory_space<vmem>>, vector<128x8xf32>
    tpu.vector_store %arg9[%c0_32, %c0_33], %49 {strides = array<i32>} : memref<128x72xf32, #tpu.memory_space<vmem>>, vector<128x8xf32>,
    %c0_34 = arith.constant 0 : index
    %c0_35 = arith.constant 0 : index
    %c1_36 = arith.constant 1 : index
    %c0_37 = arith.constant 0 : index
    %51 = vector.load %arg8[%c0_34, %c0_35, %c1_36, %c0_37] : memref<2x10x10x8xf32, #tpu.memory_space<vmem>>, vector<2x8x8x8xf32>
    %52 = vector.shape_cast %51 : vector<2x8x8x8xf32> to vector<128x8xf32>
    %c0_38 = arith.constant 0 : index
    %c8_39 = arith.constant 8 : index
    %53 = vector.load %arg9[%c0_38, %c8_39] : memref<128x72xf32, #tpu.memory_space<vmem>>, vector<128x8xf32>
    tpu.vector_store %arg9[%c0_38, %c8_39], %52 {strides = array<i32>} : memref<128x72xf32, #tpu.memory_space<vmem>>, vector<128x8xf32>,
    %c0_40 = arith.constant 0 : index
    %c0_41 = arith.constant 0 : index
    %c2 = arith.constant 2 : index
    %c0_42 = arith.constant 0 : index
    %54 = vector.load %arg8[%c0_40, %c0_41, %c2, %c0_42] : memref<2x10x10x8xf32, #tpu.memory_space<vmem>>, vector<2x8x8x8xf32>
    %55 = vector.shape_cast %54 : vector<2x8x8x8xf32> to vector<128x8xf32>
    %c0_43 = arith.constant 0 : index
    %c16_44 = arith.constant 16 : index
    %56 = vector.load %arg9[%c0_43, %c16_44] : memref<128x72xf32, #tpu.memory_space<vmem>>, vector<128x8xf32>
    tpu.vector_store %arg9[%c0_43, %c16_44], %55 {strides = array<i32>} : memref<128x72xf32, #tpu.memory_space<vmem>>, vector<128x8xf32>,
    %c0_45 = arith.constant 0 : index
    %c1_46 = arith.constant 1 : index
    %c0_47 = arith.constant 0 : index
    %c0_48 = arith.constant 0 : index
    %57 = vector.load %arg8[%c0_45, %c1_46, %c0_47, %c0_48] : memref<2x10x10x8xf32, #tpu.memory_space<vmem>>, vector<2x8x8x8xf32>
    %58 = vector.shape_cast %57 : vector<2x8x8x8xf32> to vector<128x8xf32>
    %c0_49 = arith.constant 0 : index
    %c24_50 = arith.constant 24 : index
    %59 = vector.load %arg9[%c0_49, %c24_50] : memref<128x72xf32, #tpu.memory_space<vmem>>, vector<128x8xf32>
    tpu.vector_store %arg9[%c0_49, %c24_50], %58 {strides = array<i32>} : memref<128x72xf32, #tpu.memory_space<vmem>>, vector<128x8xf32>,
    %c0_51 = arith.constant 0 : index
    %c1_52 = arith.constant 1 : index
    %c1_53 = arith.constant 1 : index
    %c0_54 = arith.constant 0 : index
    %60 = vector.load %arg8[%c0_51, %c1_52, %c1_53, %c0_54] : memref<2x10x10x8xf32, #tpu.memory_space<vmem>>, vector<2x8x8x8xf32>
    %61 = vector.shape_cast %60 : vector<2x8x8x8xf32> to vector<128x8xf32>
    %c0_55 = arith.constant 0 : index
    %c32_56 = arith.constant 32 : index
    %62 = vector.load %arg9[%c0_55, %c32_56] : memref<128x72xf32, #tpu.memory_space<vmem>>, vector<128x8xf32>
    tpu.vector_store %arg9[%c0_55, %c32_56], %61 {strides = array<i32>} : memref<128x72xf32, #tpu.memory_space<vmem>>, vector<128x8xf32>,
    %c0_57 = arith.constant 0 : index
    %c1_58 = arith.constant 1 : index
    %c2_59 = arith.constant 2 : index
    %c0_60 = arith.constant 0 : index
    %63 = vector.load %arg8[%c0_57, %c1_58, %c2_59, %c0_60] : memref<2x10x10x8xf32, #tpu.memory_space<vmem>>, vector<2x8x8x8xf32>
    %64 = vector.shape_cast %63 : vector<2x8x8x8xf32> to vector<128x8xf32>
    %c0_61 = arith.constant 0 : index
    %c40 = arith.constant 40 : index
    %65 = vector.load %arg9[%c0_61, %c40] : memref<128x72xf32, #tpu.memory_space<vmem>>, vector<128x8xf32>
    tpu.vector_store %arg9[%c0_61, %c40], %64 {strides = array<i32>} : memref<128x72xf32, #tpu.memory_space<vmem>>, vector<128x8xf32>,
    %c0_62 = arith.constant 0 : index
    %c2_63 = arith.constant 2 : index
    %c0_64 = arith.constant 0 : index
    %c0_65 = arith.constant 0 : index
    %66 = vector.load %arg8[%c0_62, %c2_63, %c0_64, %c0_65] : memref<2x10x10x8xf32, #tpu.memory_space<vmem>>, vector<2x8x8x8xf32>
    %67 = vector.shape_cast %66 : vector<2x8x8x8xf32> to vector<128x8xf32>
    %c0_66 = arith.constant 0 : index
    %c48 = arith.constant 48 : index
    %68 = vector.load %arg9[%c0_66, %c48] : memref<128x72xf32, #tpu.memory_space<vmem>>, vector<128x8xf32>
    tpu.vector_store %arg9[%c0_66, %c48], %67 {strides = array<i32>} : memref<128x72xf32, #tpu.memory_space<vmem>>, vector<128x8xf32>,
    %c0_67 = arith.constant 0 : index
    %c2_68 = arith.constant 2 : index
    %c1_69 = arith.constant 1 : index
    %c0_70 = arith.constant 0 : index
    %69 = vector.load %arg8[%c0_67, %c2_68, %c1_69, %c0_70] : memref<2x10x10x8xf32, #tpu.memory_space<vmem>>, vector<2x8x8x8xf32>
    %70 = vector.shape_cast %69 : vector<2x8x8x8xf32> to vector<128x8xf32>
    %c0_71 = arith.constant 0 : index
    %c56 = arith.constant 56 : index
    %71 = vector.load %arg9[%c0_71, %c56] : memref<128x72xf32, #tpu.memory_space<vmem>>, vector<128x8xf32>
    tpu.vector_store %arg9[%c0_71, %c56], %70 {strides = array<i32>} : memref<128x72xf32, #tpu.memory_space<vmem>>, vector<128x8xf32>,
    %c0_72 = arith.constant 0 : index
    %c2_73 = arith.constant 2 : index
    %c2_74 = arith.constant 2 : index
    %c0_75 = arith.constant 0 : index
    %72 = vector.load %arg8[%c0_72, %c2_73, %c2_74, %c0_75] : memref<2x10x10x8xf32, #tpu.memory_space<vmem>>, vector<2x8x8x8xf32>
    %73 = vector.shape_cast %72 : vector<2x8x8x8xf32> to vector<128x8xf32>
    %c0_76 = arith.constant 0 : index
    %c64 = arith.constant 64 : index
    %74 = vector.load %arg9[%c0_76, %c64] : memref<128x72xf32, #tpu.memory_space<vmem>>, vector<128x8xf32>
    tpu.vector_store %arg9[%c0_76, %c64], %73 {strides = array<i32>} : memref<128x72xf32, #tpu.memory_space<vmem>>, vector<128x8xf32>,
    %c0_77 = arith.constant 0 : index
    %c0_78 = arith.constant 0 : index
    %75 = vector.load %arg9[%c0_77, %c0_78] : memref<128x72xf32, #tpu.memory_space<vmem>>, vector<128x72xf32>
    %76 = arith.truncf %75 : vector<128x72xf32> to vector<128x72xbf16>
    %c0_79 = arith.constant 0 : index
    %c0_80 = arith.constant 0 : index
    %77 = vector.load %arg4[%c0_79, %c0_80] : memref<72x8xbf16, #tpu.memory_space<vmem>>, vector<72x8xbf16>
    %cst_81 = arith.constant dense<0.000000e+00> : vector<128x8xf32>
    %78 = tpu.matmul %76, %77, %cst_81 {dimension_numbers = #tpu.dot_dimension_numbers<[1], [0], [0], [1], [0, 0, 1, 1], [], []>} : vector<128x72xbf16>, vector<72x8xbf16>, vector<128x8xf32> -> vector<128x8xf32>
    %c0_82 = arith.constant 0 : index
    %c0_83 = arith.constant 0 : index
    %79 = vector.load %arg5[%c0_82, %c0_83] : memref<1x8xf32, #tpu.memory_space<vmem>>, vector<1x8xf32>
    %80 = vector.broadcast %79 : vector<1x8xf32> to vector<128x8xf32>
    %81 = arith.addf %78, %80 : vector<128x8xf32>
    %cst_84 = arith.constant 0.000000e+00 : f32
    %82 = vector.broadcast %cst_84 : f32 to vector<128x8xf32>
    %83 = arith.maximumf %81, %82 : vector<128x8xf32>
    %84 = tpu.transpose %83, [1, 0] : vector<128x8xf32> -> vector<8x128xf32>
    %c0_85 = arith.constant 0 : index
    %c0_86 = arith.constant 0 : index
    %85 = vector.load %arg6[%c0_85, %c0_86] : memref<8x128xf32, #tpu.memory_space<vmem>>, vector<8x128xf32>
    tpu.vector_store %arg6[%c0_85, %c0_86], %84 {strides = array<i32>} : memref<8x128xf32, #tpu.memory_space<vmem>>, vector<8x128xf32>,
    return
  }
  func.func @transform_0(%arg0: i32) -> (i32, i32, i32, i32) {
    %c0_i32 = arith.constant 0 : i32
    %c0_i32_0 = arith.constant 0 : i32
    %c0_i32_1 = arith.constant 0 : i32
    %c0_i32_2 = arith.constant 0 : i32
    %c0_i32_3 = arith.constant 0 : i32
    return %c0_i32, %c0_i32_0, %c0_i32_1, %c0_i32_2 : i32, i32, i32, i32
  }
  func.func @transform_1(%arg0: i32) -> (i32, i32) {
    %c0_i32 = arith.constant 0 : i32
    %c0_i32_0 = arith.constant 0 : i32
    %c0_i32_1 = arith.constant 0 : i32
    return %c0_i32, %c0_i32_0 : i32, i32
  }
  func.func @transform_2(%arg0: i32) -> (i32, i32) {
    %c0_i32 = arith.constant 0 : i32
    %c0_i32_0 = arith.constant 0 : i32
    %c0_i32_1 = arith.constant 0 : i32
    return %c0_i32, %c0_i32_0 : i32, i32
  }
  func.func @transform_3(%arg0: i32) -> (i32, i32) {
    %c0_i32 = arith.constant 0 : i32
    %c0_i32_0 = arith.constant 0 : i32
    %c0_i32_1 = arith.constant 0 : i32
    return %c0_i32, %c0_i32_0 : i32, i32
  }
  func.func @transform_4(%arg0: i32) -> (i32, i32) {
    %c0_i32 = arith.constant 0 : i32
    %c0_i32_0 = arith.constant 0 : i32
    %c0_i32_1 = arith.constant 0 : i32
    return %c0_i32, %c0_i32_0 : i32, i32
  }
  func.func @transform_5(%arg0: i32) -> (i32, i32) {
    %c0_i32 = arith.constant 0 : i32
    %c0_i32_0 = arith.constant 0 : i32
    %c0_i32_1 = arith.constant 0 : i32
    return %c0_i32, %c0_i32_0 : i32, i32
  }
}

</mosaic_0001>

<bundles_post_ra>
// kernel: tpu_custom_call.1
= control target key start
LH: loop header
LB: loop body
LE: loop exit
PB: predicated region body
PF: predicated region fallthrough
CT: control target
= control target key end

     0   :  { %s2626_s22 = smov 124   ;;  %s4234_s0 = inlined_call_operand.vmem [shape: f32[2,10,10,16], index: 0, kind: input, shape index: {}]   ;;  %s4235_s1 = inlined_call_operand.vmem [shape: bf16[36,8], index: 1, kind: input, shape index: {}]   ;;  %s4236_s2 = inlined_call_operand.vmem [shape: f32[1,8], index: 2, kind: input, shape index: {}]   ;;  %s4237_s3 = inlined_call_operand.vmem [shape: bf16[72,8], index: 3, kind: input, shape index: {}]   ;;  %s4238_s4 = inlined_call_operand.vmem [shape: f32[1,8], index: 4, kind: input, shape index: {}]   ;;  %s4239_s5 = inlined_call_operand.hbm [shape: f32[8,128], index: 5, kind: output, shape index: {}]  }
   0x1   :  { %v2675_v0 = vld [vmem:[%s4234_s0] sm:$0xff]  ;;  %v2680_v1 = vld [vmem:[%s4234_s0 + $0x10] sm:$0xff]  ;;  %v2689_v2 = vld [vmem:[%s4234_s0 + $0x8] sm:$0x3] }
   0x2   :  { %102 = vrot.lane.b32.xlu0 %v2675_v0, %s2626_s22  ;;  %106 = vrot.lane.b32.xlu1 %v2680_v1, %s2626_s22  ;;  %v2694_v3 = vld [vmem:[%s4234_s0 + $0x18] sm:$0x3]  ;;  %v2703_v4 = vld [vmem:[%s4234_s0 + $0x20] sm:$0xff] }
   0x3   :  { %v2708_v5 = vld [vmem:[%s4234_s0 + $0x28] sm:$0x3]  ;;  %v2717_v6 = vld [vmem:[%s4234_s0 + $0x30] sm:$0xff]  ;;  %v2722_v7 = vld [vmem:[%s4234_s0 + $0x38] sm:$0x3] }
   0x4   :  { %v2731_v8 = vld [vmem:[%s4234_s0 + $0x40] sm:$0xff]  ;;  %v2736_v9 = vld [vmem:[%s4234_s0 + $0x48] sm:$0x3]  ;;  %v2741_v10 = vld [vmem:[%s4234_s0 + $0x50] sm:$0xff] }
   0x5   :  { %v2746_v11 = vld [vmem:[%s4234_s0 + $0x58] sm:$0x3] }
   0x6   :  { %104 = vrot.lane.b32.xlu0 %v2689_v2, %s2626_s22  ;;  %108 = vrot.lane.b32.xlu1 %v2694_v3, %s2626_s22 }
   0xa   :  { %110 = vrot.lane.b32.xlu0 %v2703_v4, %s2626_s22  ;;  %112 = vrot.lane.b32.xlu1 %v2708_v5, %s2626_s22 }
   0xe   :  { %114 = vrot.lane.b32.xlu0 %v2717_v6, %s2626_s22  ;;  %116 = vrot.lane.b32.xlu1 %v2722_v7, %s2626_s22 }
  0x12   :  { %118 = vrot.lane.b32.xlu0 %v2731_v8, %s2626_s22  ;;  %120 = vrot.lane.b32.xlu1 %v2736_v9, %s2626_s22 }
  0x13   :  { %10 = vsyncpa [#allocation6], 0  ;;  %v2759_v12 = vld [vmem:[%s4234_s0 + $0x60] sm:$0xff]  ;;  %v2764_v13 = vld [vmem:[%s4234_s0 + $0x68] sm:$0x3]  ;;  %s2627_s27 = smov 120  }
  0x14   :  { %v2773_v14 = vld [vmem:[%s4234_s0 + $0x70] sm:$0xff]  ;;  %v2778_v15 = vld [vmem:[%s4234_s0 + $0x78] sm:$0x3]  ;;  %v2787_v16 = vld [vmem:[%s4234_s0 + $0x80] sm:$0xff]  ;;  %vm462_vm0 = vcmask 31744   ;;  %vm511_vm1 = vcmask 1046528  }
  0x15   :  { %v2792_v17 = vld [vmem:[%s4234_s0 + $0x88] sm:$0x3]  ;;  %v2801_v18 = vld [vmem:[%s4234_s0 + $0x90] sm:$0xff]  ;;  %v2806_v19 = vld [vmem:[%s4234_s0 + $0x98] sm:$0x3]  ;;  %s2630_s28 = smov 4  }
  0x16   :  { %122 = vrot.lane.b32.xlu0 %v2741_v10, %s2626_s22  ;;  %124 = vrot.lane.b32.xlu1 %v2746_v11, %s2626_s22  ;;  %v2815_v20 = vld [vmem:[%s4234_s0 + $0xa0] sm:$0xff]  ;;  %v2820_v21 = vld [vmem:[%s4234_s0 + $0xa8] sm:$0x3]  ;;  %vm625_vm2 = vcmask 1045504   ;;  %s2631_s29 = smov 8   ;;  %s2632_s30 = smov 16  }
  0x17   :  { %v2829_v22 = vld [vmem:[%s4234_s0 + $0xb0] sm:$0xff]  ;;  %v2834_v23 = vld [vmem:[%s4234_s0 + $0xb8] sm:$0x3]  ;;  %v2843_v24 = vld [vmem:[%s4234_s0 + $0xc0] sm:$0xff]  ;;  %s2633_s6 = smov 20   ;;  %s2634_s7 = smov 28  }
  0x18   :  { %v2848_v25 = vld [vmem:[%s4234_s0 + $0xc8] sm:$0x3]  ;;  %v2857_v26 = vld [vmem:[%s4234_s0 + $0xd0] sm:$0xff]  ;;  %v2862_v27 = vld [vmem:[%s4234_s0 + $0xd8] sm:$0x3]  ;;  %s2635_s12 = smov 32  }
  0x19   :  { %v2871_v28 = vld [vmem:[%s4234_s0 + $0xe0] sm:$0xff]  ;;  %v2876_v29 = vld [vmem:[%s4234_s0 + $0xe8] sm:$0x3]  ;;  %v2885_v30 = vld [vmem:[%s4234_s0 + $0xf0] sm:$0xff]  ;;  %vm1237_vm3 = vcmask 1041408   ;;  %vm608_vm4 = vcmask 64544  }
  0x1a   :  { %126 = vrot.lane.b32.xlu0 %v2759_v12, %s2626_s22  ;;  %128 = vrot.lane.b32.xlu1 %v2764_v13, %s2626_s22  ;;  %v2890_v31 = vld [vmem:[%s4234_s0 + $0xf8] sm:$0x3]  ;;  %v2899_v32 = vld [vmem:[%s4234_s0 + $0x100] sm:$0xff]  ;;  %vm722_vm5 = vcmask 97344   ;;  %vm789_vm6 = vcmask 130144   ;;  %vm862_vm7 = vcmask 162944  }
  0x1b   :  { %v2904_v33 = vld [vmem:[%s4234_s0 + $0x108] sm:$0x3]  ;;  %v2913_v34 = vld [vmem:[%s4234_s0 + $0x110] sm:$0xff]  ;;  %v2918_v35 = vld [vmem:[%s4234_s0 + $0x118] sm:$0x3]  ;;  %vm933_vm8 = vcmask 195744  }
  0x1c   :  { %v2927_v36 = vld [vmem:[%s4234_s0 + $0x120] sm:$0xff]  ;;  %v2932_v37 = vld [vmem:[%s4234_s0 + $0x128] sm:$0x3]  ;;  %v2941_v38 = vld [vmem:[%s4234_s0 + $0x130] sm:$0xff]  ;;  %vm1000_vm9 = vcmask 228544   ;;  %vm1073_vm10 = vcmask 261344  }
  0x1d   :  { %v2946_v39 = vld [vmem:[%s4234_s0 + $0x138] sm:$0x3]  ;;  %s2628_s0 = smov 12   ;;  %vm1144_vm11 = vcmask 294144   ;;  %vm1212_vm12 = vcmask 293888   ;;  %vm1354_vm13 = vcmask 64512  }
  0x1e   :  { %130 = vrot.lane.b32.xlu0 %v2773_v14, %s2626_s22  ;;  %132 = vrot.lane.b32.xlu1 %v2778_v15, %s2626_s22  ;;  %vm1356_vm14 = vcmask 58368   ;;  %s2638_s15 = smov 56   ;;  %s2639_s16 = smov 64   ;;  %vm1525_vm15 = vcmask 130112  }
  0x22   :  { %134 = vrot.lane.b32.xlu0 %v2787_v16, %s2626_s22  ;;  %136 = vrot.lane.b32.xlu1 %v2792_v17, %s2626_s22 }
  0x26   :  { %138 = vrot.lane.b32.xlu0 %v2801_v18, %s2626_s22  ;;  %140 = vrot.lane.b32.xlu1 %v2806_v19, %s2626_s22 }
  0x2a   :  { %142 = vrot.lane.b32.xlu0 %v2815_v20, %s2626_s22  ;;  %144 = vrot.lane.b32.xlu1 %v2820_v21, %s2626_s22 }
  0x2e   :  { %146 = vrot.lane.b32.xlu0 %v2829_v22, %s2626_s22  ;;  %148 = vrot.lane.b32.xlu1 %v2834_v23, %s2626_s22 }
  0x32   :  { %150 = vrot.lane.b32.xlu0 %v2843_v24, %s2626_s22  ;;  %152 = vrot.lane.b32.xlu1 %v2848_v25, %s2626_s22 }
  0x36   :  { %154 = vrot.lane.b32.xlu0 %v2857_v26, %s2626_s22  ;;  %156 = vrot.lane.b32.xlu1 %v2862_v27, %s2626_s22 }
  0x3a   :  { %158 = vrot.lane.b32.xlu0 %v2871_v28, %s2626_s22  ;;  %160 = vrot.lane.b32.xlu1 %v2876_v29, %s2626_s22 }
  0x3e   :  { %162 = vrot.lane.b32.xlu0 %v2885_v30, %s2626_s22  ;;  %164 = vrot.lane.b32.xlu1 %v2890_v31, %s2626_s22 }
  0x42   :  { %166 = vrot.lane.b32.xlu0 %v2899_v32, %s2626_s22  ;;  %168 = vrot.lane.b32.xlu1 %v2904_v33, %s2626_s22 }
  0x46   :  { %170 = vrot.lane.b32.xlu0 %v2913_v34, %s2626_s22  ;;  %172 = vrot.lane.b32.xlu1 %v2918_v35, %s2626_s22 }
  0x4a   :  { %174 = vrot.lane.b32.xlu0 %v2927_v36, %s2626_s22  ;;  %176 = vrot.lane.b32.xlu1 %v2932_v37, %s2626_s22 }
  0x4e   :  { %178 = vrot.lane.b32.xlu0 %v2941_v38, %s2626_s22  ;;  %180 = vrot.lane.b32.xlu1 %v2946_v39, %s2626_s22  ;;  %s2629_s22 = smov 24  }
  0x74   :  { %v103_v40 = vpop.permute.xlu0 %102  ;;  %v107_v41 = vpop.permute.xlu1 %106 }
  0x75   :  { %v2953_v42 = vmax.f32 %v2675_v0, %v103_v40  ;;  %v2958_v43 = vmax.f32 %v2680_v1, %v107_v41 }
  0x77   :  { %302 = vrot.lane.b32.xlu0 %v2953_v42, %s2627_s27 }
  0x78   :  { %v105_v44 = vpop.permute.xlu0 %104  ;;  %v109_v45 = vpop.permute.xlu1 %108 }
  0x79   :  { %v2961_v46 = vmax.f32 %v2689_v2, %v105_v44  ;;  %v2968_v47 = vmax.f32 %v2694_v3, %v109_v45 }
  0x7b   :  { %306 = vrot.lane.b32.xlu0 %v2958_v43, %s2627_s27  ;;  %304 = vrot.lane.b32.xlu1 %v2961_v46, %s2627_s27 }
  0x7c   :  { %v111_v48 = vpop.permute.xlu0 %110  ;;  %v113_v49 = vpop.permute.xlu1 %112 }
  0x7d   :  { %v2971_v50 = vmax.f32 %v2703_v4, %v111_v48  ;;  %v2978_v51 = vmax.f32 %v2708_v5, %v113_v49 }
  0x7f   :  { %308 = vrot.lane.b32.xlu1 %v2968_v47, %s2627_s27  ;;  %310 = vrot.lane.b32.xlu0 %v2971_v50, %s2627_s27 }
  0x80   :  { %v115_v52 = vpop.permute.xlu0 %114  ;;  %v117_v53 = vpop.permute.xlu1 %116 }
  0x81   :  { %v2981_v54 = vmax.f32 %v2717_v6, %v115_v52  ;;  %v2988_v55 = vmax.f32 %v2722_v7, %v117_v53 }
  0x83   :  { %312 = vrot.lane.b32.xlu1 %v2978_v51, %s2627_s27  ;;  %314 = vrot.lane.b32.xlu0 %v2981_v54, %s2627_s27 }
  0x84   :  { %v119_v56 = vpop.permute.xlu0 %118  ;;  %v121_v57 = vpop.permute.xlu1 %120 }
  0x85   :  { %v2991_v58 = vmax.f32 %v2731_v8, %v119_v56  ;;  %v2998_v59 = vmax.f32 %v2736_v9, %v121_v57 }
  0x87   :  { %316 = vrot.lane.b32.xlu1 %v2988_v55, %s2627_s27  ;;  %318 = vrot.lane.b32.xlu0 %v2991_v58, %s2627_s27 }
  0x88   :  { %v123_v60 = vpop.permute.xlu0 %122  ;;  %v125_v61 = vpop.permute.xlu1 %124 }
  0x89   :  { %v3001_v62 = vmax.f32 %v2741_v10, %v123_v60  ;;  %v3008_v63 = vmax.f32 %v2746_v11, %v125_v61 }
  0x8b   :  { %320 = vrot.lane.b32.xlu1 %v2998_v59, %s2627_s27  ;;  %322 = vrot.lane.b32.xlu0 %v3001_v62, %s2627_s27 }
  0x8c   :  { %v127_v0 = vpop.permute.xlu0 %126  ;;  %v129_v1 = vpop.permute.xlu1 %128 }
  0x8d   :  { %v3011_v2 = vmax.f32 %v2759_v12, %v127_v0  ;;  %v3018_v3 = vmax.f32 %v2764_v13, %v129_v1 }
  0x8f   :  { %324 = vrot.lane.b32.xlu1 %v3008_v63, %s2627_s27  ;;  %326 = vrot.lane.b32.xlu0 %v3011_v2, %s2627_s27 }
  0x90   :  { %v131_v4 = vpop.permute.xlu0 %130  ;;  %v133_v5 = vpop.permute.xlu1 %132 }
  0x91   :  { %v3021_v6 = vmax.f32 %v2773_v14, %v131_v4  ;;  %v3028_v7 = vmax.f32 %v2778_v15, %v133_v5 }
  0x93   :  { %328 = vrot.lane.b32.xlu1 %v3018_v3, %s2627_s27  ;;  %330 = vrot.lane.b32.xlu0 %v3021_v6, %s2627_s27 }
  0x94   :  { %v135_v8 = vpop.permute.xlu0 %134  ;;  %v137_v9 = vpop.permute.xlu1 %136 }
  0x95   :  { %v3031_v10 = vmax.f32 %v2787_v16, %v135_v8  ;;  %v3038_v11 = vmax.f32 %v2792_v17, %v137_v9 }
  0x97   :  { %332 = vrot.lane.b32.xlu1 %v3028_v7, %s2627_s27  ;;  %334 = vrot.lane.b32.xlu0 %v3031_v10, %s2627_s27 }
  0x98   :  { %v139_v12 = vpop.permute.xlu0 %138  ;;  %v141_v13 = vpop.permute.xlu1 %140 }
  0x99   :  { %v3041_v14 = vmax.f32 %v2801_v18, %v139_v12  ;;  %v3048_v15 = vmax.f32 %v2806_v19, %v141_v13 }
  0x9b   :  { %336 = vrot.lane.b32.xlu1 %v3038_v11, %s2627_s27  ;;  %338 = vrot.lane.b32.xlu0 %v3041_v14, %s2627_s27 }
  0x9c   :  { %v143_v16 = vpop.permute.xlu0 %142  ;;  %v145_v40 = vpop.permute.xlu1 %144 }
  0x9d   :  { %v3051_v41 = vmax.f32 %v2815_v20, %v143_v16  ;;  %v3058_v17 = vmax.f32 %v2820_v21, %v145_v40 }
  0x9f   :  { %340 = vrot.lane.b32.xlu1 %v3048_v15, %s2627_s27  ;;  %342 = vrot.lane.b32.xlu0 %v3051_v41, %s2627_s27 }
  0xa0   :  { %v147_v18 = vpop.permute.xlu0 %146  ;;  %v149_v44 = vpop.permute.xlu1 %148 }
  0xa1   :  { %v3061_v45 = vmax.f32 %v2829_v22, %v147_v18  ;;  %v3068_v19 = vmax.f32 %v2834_v23, %v149_v44 }
  0xa3   :  { %344 = vrot.lane.b32.xlu1 %v3058_v17, %s2627_s27  ;;  %346 = vrot.lane.b32.xlu0 %v3061_v45, %s2627_s27 }
  0xa4   :  { %v151_v20 = vpop.permute.xlu0 %150  ;;  %v153_v48 = vpop.permute.xlu1 %152 }
  0xa5   :  { %v3071_v49 = vmax.f32 %v2843_v24, %v151_v20  ;;  %v3078_v21 = vmax.f32 %v2848_v25, %v153_v48 }
  0xa7   :  { %348 = vrot.lane.b32.xlu1 %v3068_v19, %s2627_s27  ;;  %350 = vrot.lane.b32.xlu0 %v3071_v49, %s2627_s27 }
  0xa8   :  { %v155_v22 = vpop.permute.xlu0 %154  ;;  %v157_v52 = vpop.permute.xlu1 %156 }
  0xa9   :  { %v3081_v53 = vmax.f32 %v2857_v26, %v155_v22  ;;  %v3088_v23 = vmax.f32 %v2862_v27, %v157_v52 }
  0xab   :  { %352 = vrot.lane.b32.xlu1 %v3078_v21, %s2627_s27  ;;  %354 = vrot.lane.b32.xlu0 %v3081_v53, %s2627_s27 }
  0xac   :  { %v159_v24 = vpop.permute.xlu0 %158  ;;  %v161_v56 = vpop.permute.xlu1 %160 }
  0xad   :  { %v3091_v57 = vmax.f32 %v2871_v28, %v159_v24  ;;  %v3098_v25 = vmax.f32 %v2876_v29, %v161_v56 }
  0xaf   :  { %356 = vrot.lane.b32.xlu1 %v3088_v23, %s2627_s27  ;;  %358 = vrot.lane.b32.xlu0 %v3091_v57, %s2627_s27 }
  0xb0   :  { %v163_v26 = vpop.permute.xlu0 %162  ;;  %v165_v60 = vpop.permute.xlu1 %164 }
  0xb1   :  { %v3101_v61 = vmax.f32 %v2885_v30, %v163_v26  ;;  %v3108_v27 = vmax.f32 %v2890_v31, %v165_v60 }
  0xb3   :  { %360 = vrot.lane.b32.xlu1 %v3098_v25, %s2627_s27  ;;  %362 = vrot.lane.b32.xlu0 %v3101_v61, %s2627_s27 }
  0xb4   :  { %v167_v28 = vpop.permute.xlu0 %166  ;;  %v169_v0 = vpop.permute.xlu1 %168 }
  0xb5   :  { %v3111_v1 = vmax.f32 %v2899_v32, %v167_v28  ;;  %v3118_v29 = vmax.f32 %v2904_v33, %v169_v0 }
  0xb7   :  { %364 = vrot.lane.b32.xlu1 %v3108_v27, %s2627_s27  ;;  %366 = vrot.lane.b32.xlu0 %v3111_v1, %s2627_s27 }
  0xb8   :  { %v171_v30 = vpop.permute.xlu0 %170  ;;  %v173_v4 = vpop.permute.xlu1 %172 }
  0xb9   :  { %v3121_v5 = vmax.f32 %v2913_v34, %v171_v30  ;;  %v3128_v31 = vmax.f32 %v2918_v35, %v173_v4 }
  0xbb   :  { %368 = vrot.lane.b32.xlu1 %v3118_v29, %s2627_s27  ;;  %370 = vrot.lane.b32.xlu0 %v3121_v5, %s2627_s27 }
  0xbc   :  { %v175_v32 = vpop.permute.xlu0 %174  ;;  %v177_v8 = vpop.permute.xlu1 %176 }
  0xbd   :  { %v3131_v9 = vmax.f32 %v2927_v36, %v175_v32  ;;  %v3138_v33 = vmax.f32 %v2932_v37, %v177_v8 }
  0xbf   :  { %372 = vrot.lane.b32.xlu1 %v3128_v31, %s2627_s27  ;;  %374 = vrot.lane.b32.xlu0 %v3131_v9, %s2627_s27 }
  0xc0   :  { %v179_v34 = vpop.permute.xlu0 %178  ;;  %v181_v12 = vpop.permute.xlu1 %180 }
  0xc1   :  { %v3141_v13 = vmax.f32 %v2941_v38, %v179_v34  ;;  %v3148_v35 = vmax.f32 %v2946_v39, %v181_v12 }
  0xc3   :  { %376 = vrot.lane.b32.xlu1 %v3138_v33, %s2627_s27  ;;  %378 = vrot.lane.b32.xlu0 %v3141_v13, %s2627_s27 }
  0xc7   :  { %380 = vrot.lane.b32.xlu1 %v3148_v35, %s2627_s27 }
  0xe9   :  { %v303_v36 = vpop.permute.xlu0 %302 }
  0xea   :  { %v3153_v37 = vmax.f32 %v2953_v42, %v303_v36 }
  0xec   :  { %463 = vst.msk [vmem:[#allocation2] sm:$0xff] %vm462_vm0, %v3153_v37 }
  0xed   :  { %v307_v38 = vpop.permute.xlu0 %306  ;;  %v305_v16 = vpop.permute.xlu1 %304 }
  0xee   :  { %v3158_v40 = vmax.f32 %v2958_v43, %v307_v38  ;;  %v423_v22 = vmax.f32 %v2961_v46, %v305_v16 }
  0xf0   :  { %741 = vrot.lane.b32.xlu0 %v3158_v40, %s2628_s0  ;;  %464 = vst.msk [vmem:[#allocation2 + $0x8] sm:$0xff] %vm462_vm0, %v3158_v40  ;;  %v513_v24 = vrot.slane %v423_v22, 1 }
  0xf1   :  { %v311_v39 = vpop.permute.xlu0 %310  ;;  %v309_v42 = vpop.permute.xlu1 %308 }
  0xf2   :  { %v3165_v18 = vmax.f32 %v2971_v50, %v311_v39 }
  0xf4   :  { %743 = vrot.lane.b32.xlu1 %v3165_v18, %s2628_s0  ;;  %465 = vst.msk [vmem:[#allocation2 + $0x10] sm:$0xff] %vm462_vm0, %v3165_v18  ;;  %v518_v4 = vrot.slane %v3165_v18, 1 }
  0xf5   :  { %v315_v43 = vpop.permute.xlu0 %314  ;;  %v313_v50 = vpop.permute.xlu1 %312 }
  0xf6   :  { %v3172_v44 = vmax.f32 %v2981_v54, %v315_v43  ;;  %v427_v56 = vmax.f32 %v2978_v51, %v313_v50 }
  0xf8   :  { %745 = vrot.lane.b32.xlu0 %v3172_v44, %s2628_s0  ;;  %466 = vst.msk [vmem:[#allocation2 + $0x18] sm:$0xff] %vm462_vm0, %v3172_v44  ;;  %v519_v28 = vrot.slane %v427_v56, 1  ;;  %v521_v38 = vrot.slane %v3172_v44, 1  ;;  %v633_v39 = vrot.slane %v427_v56, 2 }
  0xf9   :  { %v319_v20 = vpop.permute.xlu0 %318  ;;  %v317_v46 = vpop.permute.xlu1 %316 }
  0xfa   :  { %v3179_v48 = vmax.f32 %v2991_v58, %v319_v20  ;;  %v425_v58 = vmax.f32 %v2968_v47, %v309_v42  ;;  %v429_v51 = vmax.f32 %v2988_v55, %v317_v46  ;;  %v627_v55 = vrot.slane %v423_v22, 2 }
  0xfb   :  { %v3216_v34 = vsel %vm511_vm1, %v518_v4, %v519_v28  ;;  %v632_v22 = vrot.slane %v3165_v18, 2  ;;  %v635_v46 = vrot.slane %v3172_v44, 2 }
  0xfc   :  { %952 = vrot.lane.b32.xlu0 %v3165_v18, %s2629_s22  ;;  %747 = vrot.lane.b32.xlu1 %v3179_v48, %s2628_s0  ;;  %467 = vst.msk [vmem:[#allocation2 + $0x20] sm:$0xff] %vm462_vm0, %v3179_v48  ;;  %v516_v47 = vrot.slane %v425_v58, 1  ;;  %v522_v8 = vrot.slane %v429_v51, 1  ;;  %v630_v16 = vrot.slane %v425_v58, 2 }
  0xfd   :  { %v323_v54 = vpop.permute.xlu0 %322  ;;  %v321_v20 = vpop.permute.xlu1 %320 }
  0xfe   :  { %v3189_v52 = vmax.f32 %v3001_v62, %v323_v54  ;;  %v512_v62 = vrot.slane %v3153_v37, 1  ;;  %v523_v43 = vsel %vm511_vm1, %v521_v38, %v522_v8  ;;  %v636_v54 = vrot.slane %v429_v51, 2 }
  0xff   :  { %v431_v18 = vmax.f32 %v2998_v59, %v321_v20  ;;  %v524_v51 = vrot.slane %v3179_v48, 1  ;;  %v638_v8 = vrot.slane %v3179_v48, 2 }
 0x100   :  { %956 = vrot.lane.b32.xlu0 %v3179_v48, %s2629_s22  ;;  %954 = vrot.lane.b32.xlu1 %v3172_v44, %s2629_s22  ;;  %468 = vst.msk [vmem:[#allocation2 + $0x28] sm:$0xff] %vm462_vm0, %v3189_v52  ;;  %v514_v0 = vsel %vm511_vm1, %v512_v62, %v513_v24  ;;  %v634_v24 = vsel %vm625_vm2, %v632_v22, %v633_v39  ;;  %v527_v39 = vrot.slane %v3189_v52, 1  ;;  %v2595_v22 = vld [vmem:[%s4235_s1 + $0x8] sm:$0xff]  }
 0x101   :  { %v327_v26 = vpop.permute.xlu0 %326 }
 0x102   :  { %v3201_v60 = vmax.f32 %v3011_v2, %v327_v26  ;;  %v515_v2 = vrot.slane %v3158_v40, 1  ;;  %v325_v26 = vpop.permute.xlu1 %324 }
 0x104   :  { %560 = vrot.lane.b32.xlu0 %v514_v0, %s2630_s28  ;;  %958 = vrot.lane.b32.xlu1 %v3189_v52, %s2629_s22  ;;  %469 = vst.msk [vmem:[#allocation2 + $0x30] sm:$0xff] %vm462_vm0, %v3201_v60  ;;  %v517_v12 = vsel %vm511_vm1, %v515_v2, %v516_v47 }
 0x105   :  { %v331_v30 = vpop.permute.xlu0 %330 }
 0x106   :  { %v3213_v32 = vmax.f32 %v3021_v6, %v331_v30  ;;  %v626_v6 = vrot.slane %v3153_v37, 2  ;;  %v629_v37 = vrot.slane %v3158_v40, 2  ;;  %v3246_v40 = vsel %vm625_vm2, %v635_v46, %v636_v54  ;;  %v329_v28 = vpop.permute.xlu1 %328  ;;  %v2596_v54 = vld [vmem:[%s4235_s1 + $0x10] ss:$0 sps:$4 sm:$0x33]  }
 0x107   :  { %v641_v46 = vrot.slane %v3189_v52, 2 }
 0x108   :  { %564 = vrot.lane.b32.xlu0 %v3216_v34, %s2630_s28  ;;  %562 = vrot.lane.b32.xlu1 %v517_v12, %s2630_s28  ;;  %470 = vst.msk [vmem:[#allocation2 + $0x38] sm:$0xff] %vm462_vm0, %v3213_v32  ;;  %v628_v42 = vsel %vm625_vm2, %v626_v6, %v627_v55  ;;  %v631_v58 = vsel %vm625_vm2, %v629_v37, %v630_v16  ;;  %v639_v55 = vrot.slane %v431_v18, 2 }
 0x109   :  { %v3224_v36 = vpop.permute.xlu0 %334  ;;  %v433_v6 = vmax.f32 %v3008_v63, %v325_v26  ;;  %v2594_v63 = vld [vmem:[%s4235_s1] sm:$0xff]   ;;  %v435_v37 = vmax.f32 %v3018_v3, %v329_v28  ;;  %v530_v26 = vrot.slane %v3201_v60, 1  ;;  %s2637_s1 = smov 48  }
 0x10a   :  { %v333_v4 = vpop.permute.xlu1 %332  ;;  %2528 = vmatprep.subr.bf16.mxu0 %v2594_v63 }
 0x10b   :  { %2529 = vmatpush3.bf16.msra.mxu0 %v2594_v63  ;;  %v531_v3 = vrot.slane %v435_v37, 1  ;;  %v645_v28 = vrot.slane %v435_v37, 2 }
 0x10c   :  { %674 = vrot.lane.b32.xlu0 %v628_v42, %s2631_s29  ;;  %566 = vrot.lane.b32.xlu1 %v523_v43, %s2630_s28 }
 0x10d   :  { %v3232_v50 = vpop.permute.xlu0 %338  ;;  %2530 = vmatprep.subr.bf16.mxu0 %v2595_v22 }
 0x10e   :  { %v3284_v38 = vpop.permute.xlu1 %336 }
 0x10f   :  { %2531 = vmatpush3.bf16.msra.mxu0 %v2595_v22 }
 0x110   :  { %678 = vrot.lane.b32.xlu0 %v634_v24, %s2631_s29  ;;  %676 = vrot.lane.b32.xlu1 %v631_v58, %s2631_s29 }
 0x111   :  { %v343_v56 = vpop.permute.xlu0 %342  ;;  %2576 = vmatprep.subr.msk.bf16.mxu0 %vm1237_vm3, %v2596_v54 }
 0x112   :  { %v3242_v62 = vmax.f32 %v3051_v41, %v343_v56  ;;  %v525_v41 = vrot.slane %v431_v18, 1  ;;  %v3302_v42 = vpop.permute.xlu1 %340  ;;  %v437_v56 = vmax.f32 %v3028_v7, %v333_v4  ;;  %v533_v7 = vrot.slane %v3213_v32, 1 }
 0x114   :  { %814 = vrot.lane.b32.xlu0 %v517_v12, %s2632_s30  ;;  %680 = vrot.lane.b32.xlu1 %v3246_v40, %s2631_s29  ;;  %471 = vst.msk [vmem:[#allocation2 + $0x40] sm:$0xff] %vm462_vm0, %v3242_v62  ;;  %v526_v30 = vsel %vm511_vm1, %v524_v51, %v525_v41  ;;  %v532_v41 = vsel %vm511_vm1, %v530_v26, %v531_v3 }
 0x115   :  { %v347_v47 = vpop.permute.xlu0 %346 }
 0x116   :  { %v3254_v44 = vmax.f32 %v3061_v45, %v347_v47 }
 0x118   :  { %818 = vrot.lane.b32.xlu0 %v523_v43, %s2632_s30  ;;  %816 = vrot.lane.b32.xlu1 %v3216_v34, %s2632_s30  ;;  %472 = vst.msk [vmem:[#allocation2 + $0x48] sm:$0xff] %vm462_vm0, %v3254_v44 }
 0x119   :  { %v351_v59 = vpop.permute.xlu0 %350 }
 0x11a   :  { %v3263_v0 = vmax.f32 %v3071_v49, %v351_v59 }
 0x11c   :  { %885 = vrot.lane.b32.xlu0 %v631_v58, %s2633_s6  ;;  %820 = vrot.lane.b32.xlu1 %v526_v30, %s2632_s30  ;;  %473 = vst.msk [vmem:[#allocation2 + $0x50] sm:$0xff] %vm462_vm0, %v3263_v0  ;;  %v3322_v58 = vpop.permute.xlu1 %344 }
 0x11d   :  { %v355_v45 = vpop.permute.xlu0 %354 }
 0x11e   :  { %v3271_v2 = vmax.f32 %v3081_v53, %v355_v45  ;;  %v640_v53 = vsel %vm625_vm2, %v638_v8, %v639_v55  ;;  %v648_v45 = vrot.slane %v437_v56, 2  ;;  %v647_v55 = vrot.slane %v3213_v32, 2 }
 0x120   :  { %889 = vrot.lane.b32.xlu0 %v3246_v40, %s2633_s6  ;;  %887 = vrot.lane.b32.xlu1 %v634_v24, %s2633_s6  ;;  %474 = vst.msk [vmem:[#allocation2 + $0x58] sm:$0xff] %vm462_vm0, %v3271_v2  ;;  %v3334_v18 = vpop.permute.xlu1 %348  ;;  %v649_v8 = vsel %vm625_vm2, %v647_v55, %v648_v45 }
 0x121   :  { %v359_v49 = vpop.permute.xlu0 %358  ;;  %v445_v3 = vmax.f32 %v3068_v19, %v3334_v18  ;;  %v539_v19 = vrot.slane %v3254_v44, 1 }
 0x122   :  { %v3280_v12 = vmax.f32 %v3091_v57, %v359_v49  ;;  %v528_v57 = vrot.slane %v433_v6, 1 }
 0x123   :  { %v540_v26 = vrot.slane %v445_v3, 1 }
 0x124   :  { %1025 = vrot.lane.b32.xlu0 %v3216_v34, %s2634_s7  ;;  %891 = vrot.lane.b32.xlu1 %v640_v53, %s2633_s6  ;;  %475 = vst.msk [vmem:[#allocation2 + $0x60] sm:$0xff] %vm462_vm0, %v3280_v12  ;;  %v529_v20 = vsel %vm511_vm1, %v527_v39, %v528_v57  ;;  %v3342_v51 = vpop.permute.xlu1 %352 }
 0x125   :  { %v363_v16 = vpop.permute.xlu0 %362 }
 0x126   :  { %v3292_v48 = vmax.f32 %v3101_v61, %v363_v16  ;;  %v439_v16 = vmax.f32 %v3038_v11, %v3284_v38 }
 0x128   :  { %1029 = vrot.lane.b32.xlu0 %v526_v30, %s2634_s7  ;;  %1027 = vrot.lane.b32.xlu1 %v523_v43, %s2634_s7  ;;  %476 = vst.msk [vmem:[#allocation2 + $0x68] sm:$0xff] %vm462_vm0, %v3292_v48  ;;  %v3351_v49 = vpop.permute.xlu1 %356  ;;  %v809_v57 = vrot.slane %v439_v16, 1 }
 0x129   :  { %v367_v34 = vpop.permute.xlu0 %366 }
 0x12a   :  { %v3305_v61 = vmax.f32 %v3111_v1, %v367_v34 }
 0x12c   :  { %1096 = vrot.lane.b32.xlu0 %v634_v24, %s2635_s12  ;;  %1031 = vrot.lane.b32.xlu1 %v529_v20, %s2634_s7  ;;  %477 = vst.msk [vmem:[#allocation2 + $0x70] sm:$0xff] %vm462_vm0, %v3305_v61  ;;  %v642_v24 = vrot.slane %v433_v6, 2  ;;  %v3357_v6 = vpop.permute.xlu1 %360 }
 0x12d   :  { %v371_v43 = vpop.permute.xlu0 %370 }
 0x12e   :  { %v3316_v1 = vmax.f32 %v3121_v5, %v371_v43  ;;  %v1239_v5 = vsel %vm1237_vm3, %v2596_v54, 0  ;;  %v643_v47 = vsel %vm625_vm2, %v641_v46, %v642_v24  ;;  %v440_v43 = vmax.f32 %v3041_v14, %v3232_v50 }
 0x12f   :  { %2533 = vmatpush3.bf16.msra.mxu0 %v1239_v5  ;;  %v441_v54 = vmax.f32 %v3048_v15, %v3302_v42  ;;  %vm1816_vm3 = vcmask 326912  }
 0x130   :  { %568 = vrot.lane.b32.xlu0 %v526_v30, %s2630_s28  ;;  %1098 = vrot.lane.b32.xlu1 %v3246_v40, %s2635_s12  ;;  %478 = vst.msk [vmem:[#allocation2 + $0x78] sm:$0xff] %vm462_vm0, %v3316_v1  ;;  %v534_v40 = vrot.slane %v437_v56, 1  ;;  %v644_v30 = vrot.slane %v3201_v60, 2  ;;  %v1019_v14 = vrot.slane %v440_v43, 1  ;;  %vm1622_vm0 = vcmask 195712  }
 0x131   :  { %v1020_v24 = vrot.slane %v441_v54, 1 }
 0x132   :  { %v535_v59 = vsel %vm511_vm1, %v533_v7, %v534_v40  ;;  %v646_v4 = vsel %vm625_vm2, %v644_v30, %v645_v28  ;;  %v447_v40 = vmax.f32 %v3078_v21, %v3342_v51  ;;  %v1091_v7 = vrot.slane %v441_v54, 2 }
 0x133   :  { %v1021_v56 = vsel %vm511_vm1, %v1019_v14, %v1020_v24  ;;  %v3436_v30 = vsel %vm511_vm1, %v539_v19, %v540_v26  ;;  %v1090_v21 = vrot.slane %v440_v43, 2  ;;  %v542_v51 = vrot.slane %v3263_v0, 1 }
 0x134   :  { %1100 = vrot.lane.b32.xlu0 %v640_v53, %s2635_s12  ;;  %570 = vrot.lane.b32.xlu1 %v529_v20, %s2630_s28  ;;  %v543_v28 = vrot.slane %v447_v40, 1 }
 0x138   :  { %1102 = vrot.lane.b32.xlu1 %v643_v47, %s2635_s12  ;;  %572 = vrot.lane.b32.xlu0 %v532_v41, %s2630_s28 }
 0x13c   :  { %682 = vrot.lane.b32.xlu0 %v640_v53, %s2631_s29  ;;  %574 = vrot.lane.b32.xlu1 %v535_v59, %s2630_s28  ;;  %v438_v53 = vmax.f32 %v3031_v10, %v3224_v36  ;;  %v880_v10 = vrot.slane %v439_v16, 2  ;;  %v545_v16 = vrot.slane %v3271_v2, 1 }
 0x13e   :  { %v808_v63 = vrot.slane %v438_v53, 1  ;;  %v879_v11 = vrot.slane %v438_v53, 2 }
 0x140   :  { %686 = vrot.lane.b32.xlu0 %v646_v4, %s2631_s29  ;;  %684 = vrot.lane.b32.xlu1 %v643_v47, %s2631_s29  ;;  %v810_v34 = vsel %vm511_vm1, %v808_v63, %v809_v57  ;;  %v881_v38 = vsel %vm625_vm2, %v879_v11, %v880_v10  ;;  %v657_v10 = vrot.slane %v447_v40, 2 }
 0x144   :  { %749 = vrot.lane.b32.xlu0 %v3189_v52, %s2628_s0  ;;  %688 = vrot.lane.b32.xlu1 %v649_v8, %s2631_s29  ;;  %v3369_v52 = vpop.permute.xlu1 %364 }
 0x148   :  { %753 = vrot.lane.b32.xlu0 %v3213_v32, %s2628_s0  ;;  %751 = vrot.lane.b32.xlu1 %v3201_v60, %s2628_s0  ;;  %v3374_v39 = vpop.permute.xlu1 %368 }
 0x14c   :  { %822 = vrot.lane.b32.xlu0 %v529_v20, %s2632_s30  ;;  %755 = vrot.lane.b32.xlu1 %v438_v53, %s2628_s0  ;;  %v3380_v36 = vpop.permute.xlu1 %372  ;;  %v3383_v20 = vpop.permute.xlu0 %374 }
 0x150   :  { %826 = vrot.lane.b32.xlu0 %v535_v59, %s2632_s30  ;;  %824 = vrot.lane.b32.xlu1 %v532_v41, %s2632_s30  ;;  %v3388_v22 = vpop.permute.xlu1 %376  ;;  %v3395_v37 = vpop.permute.xlu0 %378 }
 0x154   :  { %893 = vrot.lane.b32.xlu0 %v643_v47, %s2633_s6  ;;  %828 = vrot.lane.b32.xlu1 %v810_v34, %s2632_s30 }
 0x158   :  { %897 = vrot.lane.b32.xlu0 %v649_v8, %s2633_s6  ;;  %895 = vrot.lane.b32.xlu1 %v646_v4, %s2633_s6 }
 0x15c   :  { %960 = vrot.lane.b32.xlu0 %v3201_v60, %s2629_s22  ;;  %899 = vrot.lane.b32.xlu1 %v881_v38, %s2633_s6  ;;  %v3401_v60 = vpop.permute.xlu1 %380 }
 0x160   :  { %964 = vrot.lane.b32.xlu0 %v438_v53, %s2629_s22  ;;  %962 = vrot.lane.b32.xlu1 %v3213_v32, %s2629_s22  ;;  %v443_v32 = vmax.f32 %v3058_v17, %v3322_v58  ;;  %v536_v17 = vrot.slane %v3242_v62, 1  ;;  %v650_v53 = vrot.slane %v3242_v62, 2  ;;  %v656_v62 = vrot.slane %v3263_v0, 2 }
 0x162   :  { %v3403_v5 = vpop.permute.xlu0 %741  ;;  %v537_v42 = vrot.slane %v443_v32, 1  ;;  %v651_v55 = vrot.slane %v443_v32, 2  ;;  %v3468_v14 = vsel %vm625_vm2, %v656_v62, %v657_v10 }
 0x164   :  { %1033 = vrot.lane.b32.xlu0 %v532_v41, %s2634_s7  ;;  %966 = vrot.lane.b32.xlu1 %v440_v43, %s2629_s22  ;;  %v538_v47 = vsel %vm511_vm1, %v536_v17, %v537_v42  ;;  %v652_v11 = vsel %vm625_vm2, %v650_v53, %v651_v55  ;;  %v653_v43 = vrot.slane %v3254_v44, 2 }
 0x166   :  { %v3409_v50 = vpop.permute.xlu1 %743 }
 0x168   :  { %1037 = vrot.lane.b32.xlu0 %v810_v34, %s2634_s7  ;;  %1035 = vrot.lane.b32.xlu1 %v535_v59, %s2634_s7  ;;  %v449_v59 = vmax.f32 %v3088_v23, %v3351_v49  ;;  %v1092_v23 = vsel %vm625_vm2, %v1090_v21, %v1091_v7  ;;  %v3447_v49 = vsel %vm511_vm1, %v542_v51, %v543_v28  ;;  %v654_v34 = vrot.slane %v445_v3, 2 }
 0x169   :  { %v659_v3 = vrot.slane %v3271_v2, 2 }
 0x16a   :  { %v3411_v15 = vpop.permute.xlu0 %745  ;;  %v660_v32 = vrot.slane %v449_v59, 2  ;;  %v655_v42 = vsel %vm625_vm2, %v653_v43, %v654_v34 }
 0x16c   :  { %1104 = vrot.lane.b32.xlu0 %v646_v4, %s2635_s12  ;;  %1039 = vrot.lane.b32.xlu1 %v1021_v56, %s2634_s7  ;;  %v3480_v26 = vsel %vm625_vm2, %v659_v3, %v660_v32 }
 0x16e   :  { %v3419_v58 = vpop.permute.xlu1 %747  ;;  %v3421_v46 = vpop.permute.xlu0 %952 }
 0x170   :  { %1106 = vrot.lane.b32.xlu1 %v649_v8, %s2635_s12  ;;  %576 = vrot.lane.b32.xlu0 %v538_v47, %s2630_s28  ;;  %v546_v8 = vrot.slane %v449_v59, 1 }
 0x172   :  { %v3429_v18 = vpop.permute.xlu1 %954  ;;  %v3431_v41 = vpop.permute.xlu0 %956 }
 0x174   :  { %1108 = vrot.lane.b32.xlu0 %v881_v38, %s2635_s12  ;;  %578 = vrot.lane.b32.xlu1 %v3436_v30, %s2630_s28  ;;  %v3458_v38 = vsel %vm511_vm1, %v545_v16, %v546_v8 }
 0x176   :  { %v3442_v45 = vpop.permute.xlu1 %958  ;;  %v561_v4 = vpop.permute.xlu0 %560 }
 0x177   :  { %609 = vst.msk [vmem:[#allocation2] sm:$0xff] %vm608_vm4, %v561_v4 }
 0x178   :  { %1110 = vrot.lane.b32.xlu1 %v1092_v23, %s2635_s12  ;;  %580 = vrot.lane.b32.xlu0 %v3447_v49, %s2630_s28 }
 0x17a   :  { %v563_v57 = vpop.permute.xlu1 %562  ;;  %v565_v63 = vpop.permute.xlu0 %564 }
 0x17b   :  { %610 = vst.msk [vmem:[#allocation2 + $0x8] sm:$0xff] %vm608_vm4, %v563_v57  ;;  %611 = vst.msk [vmem:[#allocation2 + $0x10] sm:$0xff] %vm608_vm4, %v565_v63 }
 0x17c   :  { %690 = vrot.lane.b32.xlu0 %v652_v11, %s2631_s29  ;;  %582 = vrot.lane.b32.xlu1 %v3458_v38, %s2630_s28  ;;  %v455_v11 = vmax.f32 %v3118_v29, %v3374_v39  ;;  %v665_v39 = vrot.slane %v3292_v48, 2 }
 0x17e   :  { %v567_v54 = vpop.permute.xlu1 %566  ;;  %v675_v24 = vpop.permute.xlu0 %674  ;;  %v555_v32 = vrot.slane %v455_v11, 1 }
 0x17f   :  { %612 = vst.msk [vmem:[#allocation2 + $0x18] sm:$0xff] %vm608_vm4, %v567_v54 }
 0x180   :  { %723 = vst.msk [vmem:[#allocation2] sm:$0xff] %vm722_vm5, %v675_v24  ;;  %694 = vrot.lane.b32.xlu0 %v3468_v14, %s2631_s29  ;;  %692 = vrot.lane.b32.xlu1 %v655_v42, %s2631_s29 }
 0x181   :  { %790 = vst.msk [vmem:[#allocation2] sm:$0xff] %vm789_vm6, %v3403_v5 }
 0x182   :  { %v677_v56 = vpop.permute.xlu1 %676  ;;  %v679_v17 = vpop.permute.xlu0 %678 }
 0x183   :  { %724 = vst.msk [vmem:[#allocation2 + $0x8] sm:$0xff] %vm722_vm5, %v677_v56  ;;  %725 = vst.msk [vmem:[#allocation2 + $0x10] sm:$0xff] %vm722_vm5, %v679_v17 }
 0x184   :  { %757 = vrot.lane.b32.xlu0 %v3254_v44, %s2628_s0  ;;  %696 = vrot.lane.b32.xlu1 %v3480_v26, %s2631_s29  ;;  %791 = vst.msk [vmem:[#allocation2 + $0x8] sm:$0xff] %vm789_vm6, %v3409_v50  ;;  %792 = vst.msk [vmem:[#allocation2 + $0x10] sm:$0xff] %vm789_vm6, %v3411_v15  ;;  %v451_v15 = vmax.f32 %v3098_v25, %v3357_v6  ;;  %v548_v25 = vrot.slane %v3280_v12, 1 }
 0x186   :  { %v681_v5 = vpop.permute.xlu1 %680  ;;  %v815_v40 = vpop.permute.xlu0 %814  ;;  %v549_v19 = vrot.slane %v451_v15, 1 }
 0x187   :  { %726 = vst.msk [vmem:[#allocation2 + $0x18] sm:$0xff] %vm722_vm5, %v681_v5 }
 0x188   :  { %863 = vst.msk [vmem:[#allocation2] sm:$0xff] %vm862_vm7, %v815_v40  ;;  %761 = vrot.lane.b32.xlu0 %v3271_v2, %s2628_s0  ;;  %759 = vrot.lane.b32.xlu1 %v3263_v0, %s2628_s0  ;;  %v550_v28 = vsel %vm511_vm1, %v548_v25, %v549_v19 }
 0x189   :  { %793 = vst.msk [vmem:[#allocation2 + $0x18] sm:$0xff] %vm789_vm6, %v3419_v58 }
 0x18a   :  { %v817_v44 = vpop.permute.xlu1 %816  ;;  %v819_v50 = vpop.permute.xlu0 %818 }
 0x18b   :  { %864 = vst.msk [vmem:[#allocation2 + $0x8] sm:$0xff] %vm862_vm7, %v817_v44  ;;  %865 = vst.msk [vmem:[#allocation2 + $0x10] sm:$0xff] %vm862_vm7, %v819_v50  ;;  %v669_v44 = vrot.slane %v455_v11, 2 }
 0x18c   :  { %830 = vrot.lane.b32.xlu0 %v3436_v30, %s2632_s30  ;;  %763 = vrot.lane.b32.xlu1 %v3280_v12, %s2628_s0  ;;  %v663_v30 = vrot.slane %v451_v15, 2  ;;  %v668_v15 = vrot.slane %v3305_v61, 2 }
 0x18e   :  { %v821_v58 = vpop.permute.xlu1 %820  ;;  %v886_v47 = vpop.permute.xlu0 %885  ;;  %v3613_v25 = vsel %vm625_vm2, %v668_v15, %v669_v44 }
 0x18f   :  { %866 = vst.msk [vmem:[#allocation2 + $0x18] sm:$0xff] %vm862_vm7, %v821_v58 }
 0x190   :  { %934 = vst.msk [vmem:[#allocation2] sm:$0xff] %vm933_vm8, %v886_v47  ;;  %834 = vrot.lane.b32.xlu0 %v3458_v38, %s2632_s30  ;;  %832 = vrot.lane.b32.xlu1 %v3447_v49, %s2632_s30 }
 0x191   :  { %1001 = vst.msk [vmem:[#allocation2] sm:$0xff] %vm1000_vm9, %v3421_v46 }
 0x192   :  { %v888_v6 = vpop.permute.xlu1 %887  ;;  %v890_v7 = vpop.permute.xlu0 %889 }
 0x193   :  { %935 = vst.msk [vmem:[#allocation2 + $0x8] sm:$0xff] %vm933_vm8, %v888_v6  ;;  %936 = vst.msk [vmem:[#allocation2 + $0x10] sm:$0xff] %vm933_vm8, %v890_v7  ;;  %v671_v6 = vrot.slane %v3316_v1, 2 }
 0x194   :  { %901 = vrot.lane.b32.xlu0 %v655_v42, %s2633_s6  ;;  %836 = vrot.lane.b32.xlu1 %v550_v28, %s2632_s30  ;;  %1002 = vst.msk [vmem:[#allocation2 + $0x8] sm:$0xff] %vm1000_vm9, %v3429_v18  ;;  %1003 = vst.msk [vmem:[#allocation2 + $0x10] sm:$0xff] %vm1000_vm9, %v3431_v41  ;;  %v662_v18 = vrot.slane %v3280_v12, 2  ;;  %v554_v42 = vrot.slane %v3305_v61, 1 }
 0x196   :  { %v892_v46 = vpop.permute.xlu1 %891  ;;  %v1026_v59 = vpop.permute.xlu0 %1025  ;;  %v3536_v51 = vsel %vm625_vm2, %v662_v18, %v663_v30  ;;  %v3594_v17 = vsel %vm511_vm1, %v554_v42, %v555_v32  ;;  %v458_v18 = vmax.f32 %v3131_v9, %v3383_v20  ;;  %v2636_v42 = vmov 0.0  }
 0x197   :  { %937 = vst.msk [vmem:[#allocation2 + $0x18] sm:$0xff] %vm933_vm8, %v892_v46 }
 0x198   :  { %1074 = vst.msk [vmem:[#allocation2] sm:$0xff] %vm1073_vm10, %v1026_v59  ;;  %905 = vrot.lane.b32.xlu0 %v3480_v26, %s2633_s6  ;;  %903 = vrot.lane.b32.xlu1 %v3468_v14, %s2633_s6  ;;  %v811_v9 = vrot.slane %v458_v18, 1 }
 0x199   :  { %1004 = vst.msk [vmem:[#allocation2 + $0x18] sm:$0xff] %vm1000_vm9, %v3442_v45 }
 0x19a   :  { %v1028_v21 = vpop.permute.xlu1 %1027  ;;  %v1030_v41 = vpop.permute.xlu0 %1029  ;;  %1355 = vst.msk [vmem:[#allocation3] sm:$0xff] %vm1354_vm13, %v2636_v42  ;;  %1358 = vst.msk [vmem:[#allocation3 + $0x10] sm:$0xff] %vm1354_vm13, %v2636_v42 }
 0x19b   :  { %1075 = vst.msk [vmem:[#allocation2 + $0x8] sm:$0xff] %vm1073_vm10, %v1028_v21  ;;  %1076 = vst.msk [vmem:[#allocation2 + $0x10] sm:$0xff] %vm1073_vm10, %v1030_v41 }
 0x19c   :  { %968 = vrot.lane.b32.xlu0 %v3263_v0, %s2629_s22  ;;  %907 = vrot.lane.b32.xlu1 %v3536_v51, %s2633_s6  ;;  %v453_v0 = vmax.f32 %v3108_v27, %v3369_v52  ;;  %v551_v27 = vrot.slane %v3292_v48, 1  ;;  %1357 = vst.msk [vmem:[#allocation3 + $0x8] sm:$0x3] %vm1356_vm14, %v2636_v42  ;;  %1359 = vst.msk [vmem:[#allocation3 + $0x18] sm:$0x3] %vm1356_vm14, %v2636_v42 }
 0x19d   :  { %1360 = vst.msk [vmem:[#allocation3 + $0x20] sm:$0xff] %vm1354_vm13, %v2636_v42  ;;  %1362 = vst.msk [vmem:[#allocation3 + $0x30] sm:$0xff] %vm1354_vm13, %v2636_v42 }
 0x19e   :  { %v1032_v45 = vpop.permute.xlu1 %1031  ;;  %v1097_v4 = vpop.permute.xlu0 %1096  ;;  %v552_v53 = vrot.slane %v453_v0, 1  ;;  %v666_v24 = vrot.slane %v453_v0, 2  ;;  %1361 = vst.msk [vmem:[#allocation3 + $0x28] sm:$0x3] %vm1356_vm14, %v2636_v42  ;;  %1363 = vst.msk [vmem:[#allocation3 + $0x38] sm:$0x3] %vm1356_vm14, %v2636_v42 }
 0x19f   :  { %1077 = vst.msk [vmem:[#allocation2 + $0x18] sm:$0xff] %vm1073_vm10, %v1032_v45 }
 0x1a0   :  { %1145 = vst.msk [vmem:[#allocation2] sm:$0xff] %vm1144_vm11, %v1097_v4  ;;  %972 = vrot.lane.b32.xlu0 %v3280_v12, %s2629_s22  ;;  %970 = vrot.lane.b32.xlu1 %v3271_v2, %s2629_s22 }
 0x1a1   :  { %1364 = vst.msk [vmem:[#allocation3 + $0x40] sm:$0xff] %vm1354_vm13, %v2636_v42  ;;  %1366 = vst.msk [vmem:[#allocation3 + $0x50] sm:$0xff] %vm1354_vm13, %v2636_v42 }
 0x1a2   :  { %v1099_v55 = vpop.permute.xlu1 %1098  ;;  %v569_v8 = vpop.permute.xlu0 %568  ;;  %1365 = vst.msk [vmem:[#allocation3 + $0x48] sm:$0x3] %vm1356_vm14, %v2636_v42  ;;  %1367 = vst.msk [vmem:[#allocation3 + $0x58] sm:$0x3] %vm1356_vm14, %v2636_v42 }
 0x1a3   :  { %1146 = vst.msk [vmem:[#allocation2 + $0x8] sm:$0xff] %vm1144_vm11, %v1099_v55 }
 0x1a4   :  { %613 = vst.msk [vmem:[#allocation2 + $0x20] sm:$0xff] %vm608_vm4, %v569_v8  ;;  %974 = vrot.lane.b32.xlu1 %v3292_v48, %s2629_s22  ;;  %1041 = vrot.lane.b32.xlu0 %v3447_v49, %s2634_s7  ;;  %v3565_v49 = vsel %vm511_vm1, %v551_v27, %v552_v53 }
 0x1a5   :  { %1368 = vst.msk [vmem:[#allocation3 + $0x60] sm:$0xff] %vm1354_vm13, %v2636_v42  ;;  %1370 = vst.msk [vmem:[#allocation3 + $0x70] sm:$0xff] %vm1354_vm13, %v2636_v42 }
 0x1a6   :  { %v571_v23 = vpop.permute.xlu1 %570  ;;  %v1101_v12 = vpop.permute.xlu0 %1100  ;;  %1369 = vst.msk [vmem:[#allocation3 + $0x68] sm:$0x3] %vm1356_vm14, %v2636_v42  ;;  %1371 = vst.msk [vmem:[#allocation3 + $0x78] sm:$0x3] %vm1356_vm14, %v2636_v42 }
 0x1a7   :  { %614 = vst.msk [vmem:[#allocation2 + $0x28] sm:$0xff] %vm608_vm4, %v571_v23  ;;  %v1161_v16 = vld [vmem:[#allocation2] sm:$0xff]  ;;  %v882_v23 = vrot.slane %v458_v18, 2 }
 0x1a8   :  { %1147 = vst.msk [vmem:[#allocation2 + $0x10] sm:$0xff] %vm1144_vm11, %v1101_v12  ;;  %1043 = vrot.lane.b32.xlu1 %v3458_v38, %s2634_s7  ;;  %1045 = vrot.lane.b32.xlu0 %v550_v28, %s2634_s7 }
 0x1a9   :  { %1372 = vst.msk [vmem:[#allocation3 + $0x80] sm:$0xff] %vm1354_vm13, %v2636_v42  ;;  %1374 = vst.msk [vmem:[#allocation3 + $0x90] sm:$0xff] %vm1354_vm13, %v2636_v42 }
 0x1aa   :  { %v1103_v2 = vpop.permute.xlu1 %1102  ;;  %v573_v52 = vpop.permute.xlu0 %572  ;;  %v1162_v57 = vld [vmem:[#allocation2 + $0x8] sm:$0xff]  ;;  %1373 = vst.msk [vmem:[#allocation3 + $0x88] sm:$0x3] %vm1356_vm14, %v2636_v42  ;;  %1375 = vst.msk [vmem:[#allocation3 + $0x98] sm:$0x3] %vm1356_vm14, %v2636_v42 }
 0x1ab   :  { %1148 = vst.msk [vmem:[#allocation2 + $0x18] sm:$0xff] %vm1144_vm11, %v1103_v2  ;;  %v1177_v63 = vpack.c.bf16 %v1162_v57, %v1161_v16  ;;  %v3673_v16 = vmax.f32 %v3141_v13, %v3395_v37 }
 0x1ac   :  { %615 = vst.msk [vmem:[#allocation2 + $0x30] sm:$0xff] %vm608_vm4, %v573_v52  ;;  %1047 = vrot.lane.b32.xlu1 %v3565_v49, %s2634_s7  ;;  %1112 = vrot.lane.b32.xlu0 %v3468_v14, %s2635_s12  ;;  %v457_v14 = vmax.f32 %v3128_v31, %v3380_v36  ;;  %v667_v36 = vsel %vm625_vm2, %v665_v39, %v666_v24 }
 0x1ad   :  { %2534 = vmatprep.mubr.msk.bf16.mxu0 %vm1212_vm12, %v1177_v63  ;;  %v1093_v24 = vrot.slane %v3673_v16, 2  ;;  %1376 = vst.msk [vmem:[#allocation3 + $0xa0] sm:$0xff] %vm1354_vm13, %v2636_v42  ;;  %1378 = vst.msk [vmem:[#allocation3 + $0xb0] sm:$0xff] %vm1354_vm13, %v2636_v42 }
 0x1ae   :  { %v575_v34 = vpop.permute.xlu1 %574  ;;  %v683_v10 = vpop.permute.xlu0 %682  ;;  %v558_v31 = vrot.slane %v457_v14, 1  ;;  %v672_v19 = vrot.slane %v457_v14, 2  ;;  %1377 = vst.msk [vmem:[#allocation3 + $0xa8] sm:$0x3] %vm1356_vm14, %v2636_v42  ;;  %1379 = vst.msk [vmem:[#allocation3 + $0xb8] sm:$0x3] %vm1356_vm14, %v2636_v42 }
 0x1af   :  { %616 = vst.msk [vmem:[#allocation2 + $0x38] sm:$0xff] %vm608_vm4, %v575_v34  ;;  %v1163_v43 = vld [vmem:[#allocation2 + $0x10] sm:$0xff] }
 0x1b0   :  { %727 = vst.msk [vmem:[#allocation2 + $0x20] sm:$0xff] %vm722_vm5, %v683_v10  ;;  %1114 = vrot.lane.b32.xlu1 %v3480_v26, %s2635_s12  ;;  %584 = vrot.lane.b32.xlu0 %v550_v28, %s2630_s28  ;;  %v557_v26 = vrot.slane %v3316_v1, 1  ;;  %v3622_v46 = vsel %vm625_vm2, %v671_v6, %v672_v19  ;;  %v1938_v19 = vld [vmem:[#allocation3 + $0x90] sm:$0xff] }
 0x1b1   :  { %1380 = vst.msk [vmem:[#allocation3 + $0xc0] sm:$0xff] %vm1354_vm13, %v2636_v42  ;;  %1382 = vst.msk [vmem:[#allocation3 + $0xd0] sm:$0xff] %vm1354_vm13, %v2636_v42 }
 0x1b2   :  { %v685_v38 = vpop.permute.xlu1 %684  ;;  %v687_v62 = vpop.permute.xlu0 %686  ;;  %v1164_v54 = vld [vmem:[#allocation2 + $0x18] sm:$0xff]  ;;  %v3603_v50 = vsel %vm511_vm1, %v557_v26, %v558_v31  ;;  %1381 = vst.msk [vmem:[#allocation3 + $0xc8] sm:$0x3] %vm1356_vm14, %v2636_v42  ;;  %1383 = vst.msk [vmem:[#allocation3 + $0xd8] sm:$0x3] %vm1356_vm14, %v2636_v42 }
 0x1b3   :  { %728 = vst.msk [vmem:[#allocation2 + $0x28] sm:$0xff] %vm722_vm5, %v685_v38  ;;  %729 = vst.msk [vmem:[#allocation2 + $0x30] sm:$0xff] %vm722_vm5, %v687_v62  ;;  %v1178_v29 = vpack.c.bf16 %v1164_v54, %v1163_v43 }
 0x1b4   :  { %586 = vrot.lane.b32.xlu1 %v3565_v49, %s2630_s28  ;;  %1116 = vrot.lane.b32.xlu0 %v3536_v51, %s2635_s12  ;;  %1384 = vst.msk [vmem:[#allocation3 + $0xe0] sm:$0xff] %vm1354_vm13, %v2636_v42  ;;  %1386 = vst.msk [vmem:[#allocation3 + $0xf0] sm:$0xff] %vm1354_vm13, %v2636_v42 }
 0x1b5   :  { %2535 = vmatmul.mubr.msk.bf16.vlgmr.msra.gmra.mrb[0].mxu0 %vm1212_vm12, %v1178_v29  ;;  %1385 = vst.msk [vmem:[#allocation3 + $0xe8] sm:$0x3] %vm1356_vm14, %v2636_v42  ;;  %1387 = vst.msk [vmem:[#allocation3 + $0xf8] sm:$0x3] %vm1356_vm14, %v2636_v42 }
 0x1b6   :  { %v689_v3 = vpop.permute.xlu1 %688  ;;  %v750_v56 = vpop.permute.xlu0 %749  ;;  %1388 = vst.msk [vmem:[#allocation3 + $0x100] sm:$0xff] %vm1354_vm13, %v2636_v42  ;;  %1390 = vst.msk [vmem:[#allocation3 + $0x110] sm:$0xff] %vm1354_vm13, %v2636_v42 }
 0x1b7   :  { %730 = vst.msk [vmem:[#allocation2 + $0x38] sm:$0xff] %vm722_vm5, %v689_v3 }
 0x1b8   :  { %794 = vst.msk [vmem:[#allocation2 + $0x20] sm:$0xff] %vm789_vm6, %v750_v56  ;;  %1118 = vrot.lane.b32.xlu1 %v667_v36, %s2635_s12  ;;  %588 = vrot.lane.b32.xlu0 %v3594_v17, %s2630_s28 }
 0x1b9   :  { %1389 = vst.msk [vmem:[#allocation3 + $0x108] sm:$0x3] %vm1356_vm14, %v2636_v42  ;;  %1391 = vst.msk [vmem:[#allocation3 + $0x118] sm:$0x3] %vm1356_vm14, %v2636_v42 }
 0x1ba   :  { %v752_v5 = vpop.permute.xlu1 %751  ;;  %v754_v40 = vpop.permute.xlu0 %753  ;;  %1392 = vst.msk [vmem:[#allocation3 + $0x120] sm:$0xff] %vm1354_vm13, %v2636_v42  ;;  %1394 = vst.msk [vmem:[#allocation3 + $0x130] sm:$0xff] %vm1354_vm13, %v2636_v42 }
 0x1bb   :  { %795 = vst.msk [vmem:[#allocation2 + $0x28] sm:$0xff] %vm789_vm6, %v752_v5  ;;  %796 = vst.msk [vmem:[#allocation2 + $0x30] sm:$0xff] %vm789_vm6, %v754_v40 }
 0x1bc   :  { %590 = vrot.lane.b32.xlu1 %v3603_v50, %s2630_s28  ;;  %698 = vrot.lane.b32.xlu0 %v3536_v51, %s2631_s29  ;;  %1393 = vst.msk [vmem:[#allocation3 + $0x128] sm:$0x3] %vm1356_vm14, %v2636_v42  ;;  %1395 = vst.msk [vmem:[#allocation3 + $0x138] sm:$0x3] %vm1356_vm14, %v2636_v42 }
 0x1be   :  { %v756_v58 = vpop.permute.xlu1 %755  ;;  %v823_v47 = vpop.permute.xlu0 %822 }
 0x1bf   :  { %797 = vst.msk [vmem:[#allocation2 + $0x38] sm:$0xff] %vm789_vm6, %v756_v58 }
 0x1c0   :  { %867 = vst.msk [vmem:[#allocation2 + $0x20] sm:$0xff] %vm862_vm7, %v823_v47  ;;  %700 = vrot.lane.b32.xlu1 %v667_v36, %s2631_s29  ;;  %702 = vrot.lane.b32.xlu0 %v3613_v25, %s2631_s29 }
 0x1c2   :  { %v825_v7 = vpop.permute.xlu1 %824  ;;  %v827_v28 = vpop.permute.xlu0 %826 }
 0x1c3   :  { %868 = vst.msk [vmem:[#allocation2 + $0x28] sm:$0xff] %vm862_vm7, %v825_v7  ;;  %869 = vst.msk [vmem:[#allocation2 + $0x30] sm:$0xff] %vm862_vm7, %v827_v28  ;;  %v2035_v28 = vld [vmem:[#allocation3 + $0x91] sm:$0xff] }
 0x1c4   :  { %704 = vrot.lane.b32.xlu1 %v3622_v46, %s2631_s29  ;;  %765 = vrot.lane.b32.xlu0 %v3292_v48, %s2628_s0  ;;  %v459_v48 = vmax.f32 %v3138_v33, %v3388_v22 }
 0x1c6   :  { %v829_v59 = vpop.permute.xlu1 %828  ;;  %v894_v30 = vpop.permute.xlu0 %893  ;;  %v812_v4 = vrot.slane %v459_v48, 1  ;;  %v883_v0 = vrot.slane %v459_v48, 2 }
 0x1c7   :  { %870 = vst.msk [vmem:[#allocation2 + $0x38] sm:$0xff] %vm862_vm7, %v829_v59 }
 0x1c8   :  { %938 = vst.msk [vmem:[#allocation2 + $0x20] sm:$0xff] %vm933_vm8, %v894_v30  ;;  %767 = vrot.lane.b32.xlu1 %v3305_v61, %s2628_s0  ;;  %769 = vrot.lane.b32.xlu0 %v3316_v1, %s2628_s0  ;;  %v813_v22 = vsel %vm511_vm1, %v811_v9, %v812_v4  ;;  %v884_v27 = vsel %vm625_vm2, %v882_v23, %v883_v0 }
 0x1ca   :  { %v896_v21 = vpop.permute.xlu1 %895  ;;  %v898_v41 = vpop.permute.xlu0 %897 }
 0x1cb   :  { %939 = vst.msk [vmem:[#allocation2 + $0x28] sm:$0xff] %vm933_vm8, %v896_v21  ;;  %940 = vst.msk [vmem:[#allocation2 + $0x30] sm:$0xff] %vm933_vm8, %v898_v41  ;;  %v1550_v21 = vld [vmem:[#allocation3 + $0xa2] sm:$0xff] }
 0x1cc   :  { %771 = vrot.lane.b32.xlu1 %v458_v18, %s2628_s0  ;;  %838 = vrot.lane.b32.xlu0 %v3565_v49, %s2632_s30 }
 0x1ce   :  { %v900_v51 = vpop.permute.xlu1 %899  ;;  %v961_v45 = vpop.permute.xlu0 %960 }
 0x1cf   :  { %941 = vst.msk [vmem:[#allocation2 + $0x38] sm:$0xff] %vm933_vm8, %v900_v51 }
 0x1d0   :  { %1005 = vst.msk [vmem:[#allocation2 + $0x20] sm:$0xff] %vm1000_vm9, %v961_v45  ;;  %840 = vrot.lane.b32.xlu1 %v3594_v17, %s2632_s30  ;;  %842 = vrot.lane.b32.xlu0 %v3603_v50, %s2632_s30 }
 0x1d2   :  { %v963_v33 = vpop.permute.xlu1 %962  ;;  %v965_v20 = vpop.permute.xlu0 %964 }
 0x1d3   :  { %1006 = vst.msk [vmem:[#allocation2 + $0x28] sm:$0xff] %vm1000_vm9, %v963_v33  ;;  %1007 = vst.msk [vmem:[#allocation2 + $0x30] sm:$0xff] %vm1000_vm9, %v965_v20 }
 0x1d4   :  { %844 = vrot.lane.b32.xlu1 %v813_v22, %s2632_s30  ;;  %909 = vrot.lane.b32.xlu0 %v667_v36, %s2633_s6 }
 0x1d6   :  { %v967_v55 = vpop.permute.xlu1 %966  ;;  %v1034_v8 = vpop.permute.xlu0 %1033 }
 0x1d7   :  { %1008 = vst.msk [vmem:[#allocation2 + $0x38] sm:$0xff] %vm1000_vm9, %v967_v55 }
 0x1d8   :  { %1078 = vst.msk [vmem:[#allocation2 + $0x20] sm:$0xff] %vm1073_vm10, %v1034_v8  ;;  %911 = vrot.lane.b32.xlu1 %v3613_v25, %s2633_s6  ;;  %913 = vrot.lane.b32.xlu0 %v3622_v46, %s2633_s6 }
 0x1da   :  { %v1036_v12 = vpop.permute.xlu1 %1035  ;;  %v1038_v53 = vpop.permute.xlu0 %1037 }
 0x1db   :  { %1079 = vst.msk [vmem:[#allocation2 + $0x28] sm:$0xff] %vm1073_vm10, %v1036_v12  ;;  %1080 = vst.msk [vmem:[#allocation2 + $0x30] sm:$0xff] %vm1073_vm10, %v1038_v53 }
 0x1dc   :  { %915 = vrot.lane.b32.xlu1 %v884_v27, %s2633_s6  ;;  %976 = vrot.lane.b32.xlu0 %v3305_v61, %s2629_s22  ;;  %v3677_v61 = vmax.f32 %v3148_v35, %v3401_v60  ;;  %v1022_v35 = vrot.slane %v3673_v16, 1 }
 0x1de   :  { %v1040_v2 = vpop.permute.xlu1 %1039  ;;  %v1105_v52 = vpop.permute.xlu0 %1104  ;;  %v1023_v13 = vrot.slane %v3677_v61, 1  ;;  %v1094_v54 = vrot.slane %v3677_v61, 2 }
 0x1df   :  { %1081 = vst.msk [vmem:[#allocation2 + $0x38] sm:$0xff] %vm1073_vm10, %v1040_v2 }
 0x1e0   :  { %1149 = vst.msk [vmem:[#allocation2 + $0x20] sm:$0xff] %vm1144_vm11, %v1105_v52  ;;  %978 = vrot.lane.b32.xlu1 %v3316_v1, %s2629_s22  ;;  %980 = vrot.lane.b32.xlu0 %v458_v18, %s2629_s22  ;;  %v1024_v11 = vsel %vm511_vm1, %v1022_v35, %v1023_v13  ;;  %v1095_v3 = vsel %vm625_vm2, %v1093_v24, %v1094_v54  ;;  %v2132_v18 = vld [vmem:[#allocation3 + $0x92] sm:$0xff]  ;;  %vm2314_vm1 = vcmask 1043456   ;;  %vm1719_vm2 = vcmask 261312  }
 0x1e2   :  { %v1107_v57 = vpop.permute.xlu1 %1106  ;;  %v577_v49 = vpop.permute.xlu0 %576 }
 0x1e3   :  { %1150 = vst.msk [vmem:[#allocation2 + $0x28] sm:$0xff] %vm1144_vm11, %v1107_v57 }
 0x1e4   :  { %617 = vst.msk [vmem:[#allocation2 + $0x40] sm:$0xff] %vm608_vm4, %v577_v49  ;;  %982 = vrot.lane.b32.xlu1 %v3673_v16, %s2629_s22  ;;  %1049 = vrot.lane.b32.xlu0 %v3594_v17, %s2634_s7  ;;  %v1445_v17 = vld [vmem:[#allocation3 + $0x1] sm:$0xff] }
 0x1e6   :  { %v579_v1 = vpop.permute.xlu1 %578  ;;  %v1109_v63 = vpop.permute.xlu0 %1108 }
 0x1e7   :  { %618 = vst.msk [vmem:[#allocation2 + $0x48] sm:$0xff] %vm608_vm4, %v579_v1  ;;  %v1165_v34 = vld [vmem:[#allocation2 + $0x20] sm:$0xff] }
 0x1e8   :  { %1151 = vst.msk [vmem:[#allocation2 + $0x30] sm:$0xff] %vm1144_vm11, %v1109_v63  ;;  %1051 = vrot.lane.b32.xlu1 %v3603_v50, %s2634_s7  ;;  %1053 = vrot.lane.b32.xlu0 %v813_v22, %s2634_s7 }
 0x1ea   :  { %v1111_v37 = vpop.permute.xlu1 %1110  ;;  %v581_v60 = vpop.permute.xlu0 %580  ;;  %v1166_v10 = vld [vmem:[#allocation2 + $0x28] sm:$0xff] }
 0x1eb   :  { %1152 = vst.msk [vmem:[#allocation2 + $0x38] sm:$0xff] %vm1144_vm11, %v1111_v37  ;;  %v1179_v38 = vpack.c.bf16 %v1166_v10, %v1165_v34 }
 0x1ec   :  { %619 = vst.msk [vmem:[#allocation2 + $0x50] sm:$0xff] %vm608_vm4, %v581_v60  ;;  %1055 = vrot.lane.b32.xlu1 %v1024_v11, %s2634_s7  ;;  %1120 = vrot.lane.b32.xlu0 %v3613_v25, %s2635_s12  ;;  %v1542_v25 = vld [vmem:[#allocation3 + $0x2] sm:$0xff] }
 0x1ed   :  { %2538 = vmatprep.mubr.msk.bf16.mxu0 %vm1212_vm12, %v1179_v38 }
 0x1ee   :  { %v583_v62 = vpop.permute.xlu1 %582  ;;  %v691_v43 = vpop.permute.xlu0 %690 }
 0x1ef   :  { %620 = vst.msk [vmem:[#allocation2 + $0x58] sm:$0xff] %vm608_vm4, %v583_v62  ;;  %v1167_v29 = vld [vmem:[#allocation2 + $0x30] sm:$0xff] }
 0x1f0   :  { %731 = vst.msk [vmem:[#allocation2 + $0x40] sm:$0xff] %vm722_vm5, %v691_v43  ;;  %1122 = vrot.lane.b32.xlu1 %v3622_v46, %s2635_s12  ;;  %1124 = vrot.lane.b32.xlu0 %v884_v27, %s2635_s12  ;;  %v1453_v46 = vld [vmem:[#allocation3 + $0xa1] sm:$0xff] }
 0x1f2   :  { %v693_v32 = vpop.permute.xlu1 %692  ;;  %v695_v14 = vpop.permute.xlu0 %694  ;;  %v1168_v39 = vld [vmem:[#allocation2 + $0x38] sm:$0xff] }
 0x1f3   :  { %732 = vst.msk [vmem:[#allocation2 + $0x48] sm:$0xff] %vm722_vm5, %v693_v32  ;;  %733 = vst.msk [vmem:[#allocation2 + $0x50] sm:$0xff] %vm722_vm5, %v695_v14  ;;  %v1180_v56 = vpack.c.bf16 %v1168_v39, %v1167_v29 }
 0x1f4   :  { %1126 = vrot.lane.b32.xlu1 %v1095_v3, %s2635_s12  ;;  %1477 = vrot.lane.b32.xlu0 %v1445_v17, %s2631_s29 }
 0x1f5   :  { %2539 = vmatmul.mubr.msk.bf16.gmra.mrb[4].mxu0 %vm1212_vm12, %v1180_v56 }
 0x1f6   :  { %v697_v31 = vpop.permute.xlu1 %696  ;;  %v758_v36 = vpop.permute.xlu0 %757 }
 0x1f7   :  { %734 = vst.msk [vmem:[#allocation2 + $0x58] sm:$0xff] %vm722_vm5, %v697_v31 }
 0x1f8   :  { %798 = vst.msk [vmem:[#allocation2 + $0x40] sm:$0xff] %vm789_vm6, %v758_v36  ;;  %1977 = vrot.lane.b32.xlu1 %v1938_v19, %s2637_s1  ;;  %1574 = vrot.lane.b32.xlu0 %v1542_v25, %s2632_s30  ;;  %v1413_v25 = vld [vmem:[#allocation3] sm:$0xff] }
 0x1f9   :  { %1429 = vst.msk [vmem:[#allocation4] sm:$0xff] %vm1354_vm13, %v1413_v25 }
 0x1fa   :  { %v760_v26 = vpop.permute.xlu1 %759  ;;  %v762_v5 = vpop.permute.xlu0 %761 }
 0x1fb   :  { %799 = vst.msk [vmem:[#allocation2 + $0x48] sm:$0xff] %vm789_vm6, %v760_v26  ;;  %800 = vst.msk [vmem:[#allocation2 + $0x50] sm:$0xff] %vm789_vm6, %v762_v5 }
 0x1fc   :  { %2074 = vrot.lane.b32.xlu1 %v2035_v28, %s2638_s15  ;;  %1493 = vrot.lane.b32.xlu0 %v1453_v46, %s2631_s29  ;;  %v1421_v28 = vld [vmem:[#allocation3 + $0xa0] sm:$0xff] }
 0x1fd   :  { %1437 = vst.msk [vmem:[#allocation4 + $0x40] sm:$0xff] %vm1354_vm13, %v1421_v28 }
 0x1fe   :  { %v764_v40 = vpop.permute.xlu1 %763  ;;  %v831_v44 = vpop.permute.xlu0 %830 }
 0x1ff   :  { %801 = vst.msk [vmem:[#allocation2 + $0x58] sm:$0xff] %vm789_vm6, %v764_v40 }
 0x200   :  { %871 = vst.msk [vmem:[#allocation2 + $0x40] sm:$0xff] %vm862_vm7, %v831_v44  ;;  %2171 = vrot.lane.b32.xlu1 %v2132_v18, %s2639_s16  ;;  %1590 = vrot.lane.b32.xlu0 %v1550_v21, %s2632_s30 }
 0x202   :  { %v833_v50 = vpop.permute.xlu1 %832  ;;  %v835_v15 = vpop.permute.xlu0 %834 }
 0x203   :  { %872 = vst.msk [vmem:[#allocation2 + $0x48] sm:$0xff] %vm862_vm7, %v833_v50  ;;  %873 = vst.msk [vmem:[#allocation2 + $0x50] sm:$0xff] %vm862_vm7, %v835_v15 }
 0x206   :  { %v837_v58 = vpop.permute.xlu1 %836  ;;  %v902_v47 = vpop.permute.xlu0 %901 }
 0x207   :  { %874 = vst.msk [vmem:[#allocation2 + $0x58] sm:$0xff] %vm862_vm7, %v837_v58 }
 0x208   :  { %942 = vst.msk [vmem:[#allocation2 + $0x40] sm:$0xff] %vm933_vm8, %v902_v47 }
 0x20a   :  { %v904_v6 = vpop.permute.xlu1 %903  ;;  %v906_v7 = vpop.permute.xlu0 %905 }
 0x20b   :  { %943 = vst.msk [vmem:[#allocation2 + $0x48] sm:$0xff] %vm933_vm8, %v904_v6  ;;  %944 = vst.msk [vmem:[#allocation2 + $0x50] sm:$0xff] %vm933_vm8, %v906_v7 }
 0x20e   :  { %v908_v59 = vpop.permute.xlu1 %907  ;;  %v969_v30 = vpop.permute.xlu0 %968 }
 0x20f   :  { %945 = vst.msk [vmem:[#allocation2 + $0x58] sm:$0xff] %vm933_vm8, %v908_v59 }
 0x210   :  { %1009 = vst.msk [vmem:[#allocation2 + $0x40] sm:$0xff] %vm1000_vm9, %v969_v30  ;;  %v3828_v30 = vld [vmem:[%s4236_s2] ss:$0 sm:$0xff]  ;;  %s2640_s2 = smov 40  }
 0x212   :  { %v971_v41 = vpop.permute.xlu1 %970  ;;  %v973_v48 = vpop.permute.xlu0 %972 }
 0x213   :  { %1010 = vst.msk [vmem:[#allocation2 + $0x48] sm:$0xff] %vm1000_vm9, %v971_v41  ;;  %1011 = vst.msk [vmem:[#allocation2 + $0x50] sm:$0xff] %vm1000_vm9, %v973_v48 }
 0x216   :  { %v975_v51 = vpop.permute.xlu1 %974  ;;  %v1042_v45 = vpop.permute.xlu0 %1041 }
 0x217   :  { %1012 = vst.msk [vmem:[#allocation2 + $0x58] sm:$0xff] %vm1000_vm9, %v975_v51 }
 0x218   :  { %1082 = vst.msk [vmem:[#allocation2 + $0x40] sm:$0xff] %vm1073_vm10, %v1042_v45 }
 0x21a   :  { %v1044_v4 = vpop.permute.xlu1 %1043  ;;  %v1046_v9 = vpop.permute.xlu0 %1045 }
 0x21b   :  { %1083 = vst.msk [vmem:[#allocation2 + $0x48] sm:$0xff] %vm1073_vm10, %v1044_v4  ;;  %1084 = vst.msk [vmem:[#allocation2 + $0x50] sm:$0xff] %vm1073_vm10, %v1046_v9 }
 0x21e   :  { %v1048_v33 = vpop.permute.xlu1 %1047  ;;  %v1113_v20 = vpop.permute.xlu0 %1112 }
 0x21f   :  { %1085 = vst.msk [vmem:[#allocation2 + $0x58] sm:$0xff] %vm1073_vm10, %v1048_v33 }
 0x220   :  { %1153 = vst.msk [vmem:[#allocation2 + $0x40] sm:$0xff] %vm1144_vm11, %v1113_v20 }
 0x222   :  { %v1115_v22 = vpop.permute.xlu1 %1114  ;;  %v585_v55 = vpop.permute.xlu0 %584 }
 0x223   :  { %1154 = vst.msk [vmem:[#allocation2 + $0x48] sm:$0xff] %vm1144_vm11, %v1115_v22 }
 0x224   :  { %621 = vst.msk [vmem:[#allocation2 + $0x60] sm:$0xff] %vm608_vm4, %v585_v55 }
 0x226   :  { %v587_v8 = vpop.permute.xlu1 %586  ;;  %v1117_v0 = vpop.permute.xlu0 %1116 }
 0x227   :  { %622 = vst.msk [vmem:[#allocation2 + $0x68] sm:$0xff] %vm608_vm4, %v587_v8  ;;  %v1169_v53 = vld [vmem:[#allocation2 + $0x40] sm:$0xff] }
 0x228   :  { %1155 = vst.msk [vmem:[#allocation2 + $0x50] sm:$0xff] %vm1144_vm11, %v1117_v0 }
 0x22a   :  { %v1119_v23 = vpop.permute.xlu1 %1118  ;;  %v589_v12 = vpop.permute.xlu0 %588  ;;  %v1170_v27 = vld [vmem:[#allocation2 + $0x48] sm:$0xff] }
 0x22b   :  { %1156 = vst.msk [vmem:[#allocation2 + $0x58] sm:$0xff] %vm1144_vm11, %v1119_v23  ;;  %v1181_v2 = vpack.c.bf16 %v1170_v27, %v1169_v53 }
 0x22c   :  { %623 = vst.msk [vmem:[#allocation2 + $0x70] sm:$0xff] %vm608_vm4, %v589_v12 }
 0x22d   :  { %2542 = vmatprep.mubr.msk.bf16.mxu0 %vm1212_vm12, %v1181_v2 }
 0x22e   :  { %v591_v52 = vpop.permute.xlu1 %590  ;;  %v699_v16 = vpop.permute.xlu0 %698 }
 0x22f   :  { %624 = vst.msk [vmem:[#allocation2 + $0x78] sm:$0xff] %vm608_vm4, %v591_v52  ;;  %v1171_v61 = vld [vmem:[#allocation2 + $0x50] sm:$0xff]  ;;  %vm1913_vm4 = vcmask 392512  }
 0x230   :  { %735 = vst.msk [vmem:[#allocation2 + $0x60] sm:$0xff] %vm722_vm5, %v699_v16 }
 0x232   :  { %v701_v57 = vpop.permute.xlu1 %700  ;;  %v703_v49 = vpop.permute.xlu0 %702  ;;  %v1172_v1 = vld [vmem:[#allocation2 + $0x58] sm:$0xff] }
 0x233   :  { %736 = vst.msk [vmem:[#allocation2 + $0x68] sm:$0xff] %vm722_vm5, %v701_v57  ;;  %737 = vst.msk [vmem:[#allocation2 + $0x70] sm:$0xff] %vm722_vm5, %v703_v49  ;;  %v1182_v63 = vpack.c.bf16 %v1172_v1, %v1171_v61 }
 0x235   :  { %2543 = vmatmul.mubr.msk.bf16.gmra.mrb[8].mxu0 %vm1212_vm12, %v1182_v63 }
 0x236   :  { %v705_v13 = vpop.permute.xlu1 %704  ;;  %v766_v35 = vpop.permute.xlu0 %765 }
 0x237   :  { %738 = vst.msk [vmem:[#allocation2 + $0x78] sm:$0xff] %vm722_vm5, %v705_v13  ;;  %vm2011_vm5 = vcmask 458112  }
 0x238   :  { %802 = vst.msk [vmem:[#allocation2 + $0x60] sm:$0xff] %vm789_vm6, %v766_v35 }
 0x23a   :  { %v768_v37 = vpop.permute.xlu1 %767  ;;  %v770_v60 = vpop.permute.xlu0 %769 }
 0x23b   :  { %803 = vst.msk [vmem:[#allocation2 + $0x68] sm:$0xff] %vm789_vm6, %v768_v37  ;;  %804 = vst.msk [vmem:[#allocation2 + $0x70] sm:$0xff] %vm789_vm6, %v770_v60 }
 0x23e   :  { %v772_v34 = vpop.permute.xlu1 %771  ;;  %v839_v10 = vpop.permute.xlu0 %838 }
 0x23f   :  { %805 = vst.msk [vmem:[#allocation2 + $0x78] sm:$0xff] %vm789_vm6, %v772_v34  ;;  %vm2108_vm6 = vcmask 523712  }
 0x240   :  { %875 = vst.msk [vmem:[#allocation2 + $0x60] sm:$0xff] %vm862_vm7, %v839_v10 }
 0x242   :  { %v841_v11 = vpop.permute.xlu1 %840  ;;  %v843_v38 = vpop.permute.xlu0 %842 }
 0x243   :  { %876 = vst.msk [vmem:[#allocation2 + $0x68] sm:$0xff] %vm862_vm7, %v841_v11  ;;  %877 = vst.msk [vmem:[#allocation2 + $0x70] sm:$0xff] %vm862_vm7, %v843_v38 }
 0x246   :  { %v845_v62 = vpop.permute.xlu1 %844  ;;  %v910_v43 = vpop.permute.xlu0 %909 }
 0x247   :  { %878 = vst.msk [vmem:[#allocation2 + $0x78] sm:$0xff] %vm862_vm7, %v845_v62  ;;  %vm2205_vm7 = vcmask 589312  }
 0x248   :  { %946 = vst.msk [vmem:[#allocation2 + $0x60] sm:$0xff] %vm933_vm8, %v910_v43 }
 0x24a   :  { %v912_v54 = vpop.permute.xlu1 %911  ;;  %v914_v24 = vpop.permute.xlu0 %913 }
 0x24b   :  { %947 = vst.msk [vmem:[#allocation2 + $0x68] sm:$0xff] %vm933_vm8, %v912_v54  ;;  %948 = vst.msk [vmem:[#allocation2 + $0x70] sm:$0xff] %vm933_vm8, %v914_v24 }
 0x24e   :  { %v916_v32 = vpop.permute.xlu1 %915  ;;  %v977_v14 = vpop.permute.xlu0 %976 }
 0x24f   :  { %949 = vst.msk [vmem:[#allocation2 + $0x78] sm:$0xff] %vm933_vm8, %v916_v32  ;;  %vm2289_vm8 = vcmask 588800  }
 0x250   :  { %1013 = vst.msk [vmem:[#allocation2 + $0x60] sm:$0xff] %vm1000_vm9, %v977_v14 }
 0x252   :  { %v979_v29 = vpop.permute.xlu1 %978  ;;  %v981_v39 = vpop.permute.xlu0 %980 }
 0x253   :  { %1014 = vst.msk [vmem:[#allocation2 + $0x68] sm:$0xff] %vm1000_vm9, %v979_v29  ;;  %1015 = vst.msk [vmem:[#allocation2 + $0x70] sm:$0xff] %vm1000_vm9, %v981_v39  ;;  %v2597_v39 = vld [vmem:[%s4237_s3] sm:$0xff]  }
 0x254   :  { %2550 = vmatprep.subr.bf16.mxu1 %v2597_v39 }
 0x255   :  { %2551 = vmatpush3.bf16.msra.mxu1 %v2597_v39 }
 0x256   :  { %v983_v42 = vpop.permute.xlu1 %982  ;;  %v1050_v3 = vpop.permute.xlu0 %1049 }
 0x257   :  { %1016 = vst.msk [vmem:[#allocation2 + $0x78] sm:$0xff] %vm1000_vm9, %v983_v42  ;;  %v2598_v42 = vld [vmem:[%s4237_s3 + $0x8] sm:$0xff]  }
 0x258   :  { %1086 = vst.msk [vmem:[#allocation2 + $0x60] sm:$0xff] %vm1073_vm10, %v1050_v3  ;;  %2552 = vmatprep.subr.bf16.mxu1 %v2598_v42 }
 0x259   :  { %2553 = vmatpush3.bf16.msra.mxu1 %v2598_v42 }
 0x25a   :  { %v1052_v56 = vpop.permute.xlu1 %1051  ;;  %v1054_v31 = vpop.permute.xlu0 %1053 }
 0x25b   :  { %1087 = vst.msk [vmem:[#allocation2 + $0x68] sm:$0xff] %vm1073_vm10, %v1052_v56  ;;  %1088 = vst.msk [vmem:[#allocation2 + $0x70] sm:$0xff] %vm1073_vm10, %v1054_v31  ;;  %v2599_v56 = vld [vmem:[%s4237_s3 + $0x10] sm:$0xff]  }
 0x25c   :  { %2554 = vmatprep.subr.bf16.mxu1 %v2599_v56 }
 0x25d   :  { %2555 = vmatpush3.bf16.msra.mxu1 %v2599_v56 }
 0x25e   :  { %v1056_v36 = vpop.permute.xlu1 %1055  ;;  %v1121_v17 = vpop.permute.xlu0 %1120 }
 0x25f   :  { %1089 = vst.msk [vmem:[#allocation2 + $0x78] sm:$0xff] %vm1073_vm10, %v1056_v36  ;;  %v2600_v36 = vld [vmem:[%s4237_s3 + $0x18] sm:$0xff]  }
 0x260   :  { %1157 = vst.msk [vmem:[#allocation2 + $0x60] sm:$0xff] %vm1144_vm11, %v1121_v17  ;;  %2556 = vmatprep.subr.bf16.mxu1 %v2600_v36 }
 0x261   :  { %2557 = vmatpush3.bf16.msra.mxu1 %v2600_v36 }
 0x262   :  { %v1123_v26 = vpop.permute.xlu1 %1122  ;;  %v1125_v5 = vpop.permute.xlu0 %1124 }
 0x263   :  { %1158 = vst.msk [vmem:[#allocation2 + $0x68] sm:$0xff] %vm1144_vm11, %v1123_v26  ;;  %1159 = vst.msk [vmem:[#allocation2 + $0x70] sm:$0xff] %vm1144_vm11, %v1125_v5  ;;  %v2601_v26 = vld [vmem:[%s4237_s3 + $0x20] ss:$0 sps:$4 sm:$0xff]  }
 0x264   :  { %2577 = vmatprep.subr.msk.bf16.mxu1 %vm2314_vm1, %v2601_v26  ;;  %v2316_v5 = vsel %vm2314_vm1, %v2601_v26, 0 }
 0x265   :  { %2559 = vmatpush3.bf16.msra.mxu1 %v2316_v5 }
 0x266   :  { %v1127_v40 = vpop.permute.xlu1 %1126  ;;  %v1478_v6 = vpop.permute.xlu0 %1477 }
 0x267   :  { %1160 = vst.msk [vmem:[#allocation2 + $0x78] sm:$0xff] %vm1144_vm11, %v1127_v40  ;;  %v1173_v44 = vld [vmem:[#allocation2 + $0x60] sm:$0xff] }
 0x268   :  { %1526 = vst.msk [vmem:[#allocation4] sm:$0xff] %vm1525_vm15, %v1478_v6 }
 0x26a   :  { %v1174_v50 = vld [vmem:[#allocation2 + $0x68] sm:$0xff]  ;;  %v1175_v58 = vld [vmem:[#allocation2 + $0x70] sm:$0xff]  ;;  %v1575_v7 = vpop.permute.xlu0 %1574 }
 0x26b   :  { %v1183_v15 = vpack.c.bf16 %v1174_v50, %v1173_v44  ;;  %1623 = vst.msk [vmem:[#allocation4] sm:$0xff] %vm1622_vm0, %v1575_v7  ;;  %v3915_v50 = vpop.permute.xlu1 %1977 }
 0x26d   :  { %2546 = vmatprep.mubr.msk.bf16.mxu0 %vm1212_vm12, %v1183_v15 }
 0x26e   :  { %v1176_v47 = vld [vmem:[#allocation2 + $0x78] sm:$0xff]  ;;  %v1494_v46 = vpop.permute.xlu0 %1493 }
 0x26f   :  { %v1184_v19 = vpack.c.bf16 %v1176_v47, %v1175_v58  ;;  %1534 = vst.msk [vmem:[#allocation4 + $0x40] sm:$0xff] %vm1525_vm15, %v1494_v46  ;;  %v3919_v58 = vpop.permute.xlu1 %2074 }
 0x271   :  { %2547 = vmatmul.mubr.msk.bf16.gmra.mrb[12].mxu0 %vm1212_vm12, %v1184_v19 }
 0x272   :  { %v1591_v59 = vpop.permute.xlu0 %1590 }
 0x273   :  { %1631 = vst.msk [vmem:[#allocation4 + $0x40] sm:$0xff] %vm1622_vm0, %v1591_v59  ;;  %v3925_v19 = vpop.permute.xlu1 %2171 }
 0x288   :  { %v2536_v18 = vpop.f32.mrb[0].mxu0 }
 0x289   :  { %v1284_v21 = vadd.f32 %v2536_v18, %v3828_v30  ;;  %v1275_v41 = vpop.f32.mrb[1].mxu0 }
 0x28a   :  { %v1276_v48 = vadd.f32 %v3828_v30, %v1275_v41  ;;  %v2537_v51 = vpop.f32.mrb[2].mxu0 }
 0x28b   :  { %v1340_v45 = vmax.f32 %v1284_v21, 0.0  ;;  %v1287_v4 = vadd.f32 %v2537_v51, %v3828_v30  ;;  %v1278_v9 = vpop.f32.mrb[3].mxu0 }
 0x28c   :  { %v1338_v33 = vmax.f32 %v1276_v48, 0.0  ;;  %v1279_v20 = vadd.f32 %v3828_v30, %v1278_v9 }
 0x28d   :  { %1399 = vst.msk [vmem:[#allocation3 + $0x31] sm:$0xff] %vm1354_vm13, %v1340_v45  ;;  %v1341_v22 = vmax.f32 %v1287_v4, 0.0 }
 0x28e   :  { %1397 = vst.msk [vmem:[#allocation3 + $0x11] sm:$0xff] %vm1354_vm13, %v1338_v33  ;;  %v1339_v55 = vmax.f32 %v1279_v20, 0.0 }
 0x28f   :  { %1400 = vst.msk [vmem:[#allocation3 + $0x41] sm:$0xff] %vm1354_vm13, %v1341_v22 }
 0x290   :  { %1398 = vst.msk [vmem:[#allocation3 + $0x21] sm:$0xff] %vm1354_vm13, %v1339_v55 }
 0x294   :  { %v1448_v8 = vld [vmem:[#allocation3 + $0x31] sm:$0xff] }
 0x295   :  { %v1641_v0 = vld [vmem:[#allocation3 + $0x30] sm:$0xff]  ;;  %1483 = vrot.lane.b32.xlu1 %v1448_v8, %s2631_s29 }
 0x296   :  { %1675 = vrot.lane.b32.xlu0 %v1641_v0, %s2629_s22  ;;  %v1639_v23 = vld [vmem:[#allocation3 + $0x10] sm:$0xff]  ;;  %1432 = vst.msk [vmem:[#allocation4 + $0x18] sm:$0xff] %vm1354_vm13, %v1641_v0  ;;  %v1933_v12 = vld [vmem:[#allocation3 + $0x40] sm:$0xff] }
 0x297   :  { %1430 = vst.msk [vmem:[#allocation4 + $0x8] sm:$0xff] %vm1354_vm13, %v1639_v23  ;;  %v1640_v53 = vld [vmem:[#allocation3 + $0x20] sm:$0xff]  ;;  %1433 = vst.msk [vmem:[#allocation4 + $0x20] sm:$0xff] %vm1354_vm13, %v1933_v12  ;;  %v1545_v27 = vld [vmem:[#allocation3 + $0x32] sm:$0xff] }
 0x298   :  { %1431 = vst.msk [vmem:[#allocation4 + $0x10] sm:$0xff] %vm1354_vm13, %v1640_v53  ;;  %v1736_v2 = vld [vmem:[#allocation3 + $0x11] sm:$0xff]  ;;  %v2030_v16 = vld [vmem:[#allocation3 + $0x41] sm:$0xff] }
 0x299   :  { %1580 = vrot.lane.b32.xlu1 %v1545_v27, %s2632_s30  ;;  %v1833_v52 = vld [vmem:[#allocation3 + $0x12] sm:$0xff]  ;;  %v1836_v57 = vld [vmem:[#allocation3 + $0x42] sm:$0xff] }
 0x29a   :  { %1772 = vrot.lane.b32.xlu0 %v1448_v8, %s2635_s12  ;;  %v1737_v49 = vld [vmem:[#allocation3 + $0x21] sm:$0xff] }
 0x29b   :  { %v1834_v61 = vld [vmem:[#allocation3 + $0x22] sm:$0xff] }
 0x29d   :  { %1965 = vrot.lane.b32.xlu1 %v1641_v0, %s2637_s1 }
 0x29e   :  { %1869 = vrot.lane.b32.xlu0 %v1545_v27, %s2640_s2 }
 0x2a1   :  { %2062 = vrot.lane.b32.xlu1 %v1448_v8, %s2638_s15 }
 0x2a2   :  { %1671 = vrot.lane.b32.xlu0 %v1639_v23, %s2629_s22 }
 0x2a5   :  { %2159 = vrot.lane.b32.xlu1 %v1545_v27, %s2639_s16 }
 0x2a6   :  { %1768 = vrot.lane.b32.xlu0 %v1736_v2, %s2635_s12 }
 0x2a9   :  { %1479 = vrot.lane.b32.xlu1 %v1736_v2, %s2631_s29 }
 0x2aa   :  { %1865 = vrot.lane.b32.xlu0 %v1833_v52, %s2640_s2 }
 0x2ad   :  { %1576 = vrot.lane.b32.xlu1 %v1833_v52, %s2632_s30 }
 0x2ae   :  { %1967 = vrot.lane.b32.xlu0 %v1933_v12, %s2637_s1 }
 0x2b1   :  { %1677 = vrot.lane.b32.xlu1 %v1933_v12, %s2629_s22 }
 0x2b2   :  { %2064 = vrot.lane.b32.xlu0 %v2030_v16, %s2638_s15 }
 0x2b5   :  { %1774 = vrot.lane.b32.xlu1 %v2030_v16, %s2635_s12 }
 0x2b6   :  { %1485 = vrot.lane.b32.xlu0 %v2030_v16, %s2631_s29 }
 0x2b9   :  { %1871 = vrot.lane.b32.xlu1 %v1836_v57, %s2640_s2 }
 0x2ba   :  { %2161 = vrot.lane.b32.xlu0 %v1836_v57, %s2639_s16 }
 0x2bd   :  { %1673 = vrot.lane.b32.xlu1 %v1640_v53, %s2629_s22 }
 0x2be   :  { %1582 = vrot.lane.b32.xlu0 %v1836_v57, %s2632_s30 }
 0x2c1   :  { %1770 = vrot.lane.b32.xlu1 %v1737_v49, %s2635_s12 }
 0x2c2   :  { %1481 = vrot.lane.b32.xlu0 %v1737_v49, %s2631_s29 }
 0x2c5   :  { %1867 = vrot.lane.b32.xlu1 %v1834_v61, %s2640_s2 }
 0x2c6   :  { %1578 = vrot.lane.b32.xlu0 %v1834_v61, %s2632_s30 }
 0x2c8   :  { %v2540_v1 = vpop.f32.mrb[4].mxu0 }
 0x2c9   :  { %v1300_v63 = vadd.f32 %v2540_v1, %v3828_v30  ;;  %v1291_v13 = vpop.f32.mrb[5].mxu0 }
 0x2ca   :  { %1963 = vrot.lane.b32.xlu0 %v1640_v53, %s2637_s1  ;;  %v1292_v35 = vadd.f32 %v3828_v30, %v1291_v13  ;;  %v2541_v37 = vpop.f32.mrb[6].mxu0 }
 0x2cb   :  { %v1344_v60 = vmax.f32 %v1300_v63, 0.0  ;;  %v1303_v34 = vadd.f32 %v2541_v37, %v3828_v30  ;;  %v1294_v10 = vpop.f32.mrb[7].mxu0 }
 0x2cc   :  { %v1342_v11 = vmax.f32 %v1292_v35, 0.0  ;;  %v1295_v38 = vadd.f32 %v3828_v30, %v1294_v10 }
 0x2cd   :  { %1403 = vst.msk [vmem:[#allocation3 + $0x71] sm:$0xff] %vm1354_vm13, %v1344_v60  ;;  %v1345_v62 = vmax.f32 %v1303_v34, 0.0 }
 0x2ce   :  { %2060 = vrot.lane.b32.xlu0 %v1737_v49, %s2638_s15  ;;  %1401 = vst.msk [vmem:[#allocation3 + $0x51] sm:$0xff] %vm1354_vm13, %v1342_v11  ;;  %v1343_v43 = vmax.f32 %v1295_v38, 0.0 }
 0x2cf   :  { %1404 = vst.msk [vmem:[#allocation3 + $0x81] sm:$0xff] %vm1354_vm13, %v1345_v62 }
 0x2d0   :  { %1402 = vst.msk [vmem:[#allocation3 + $0x61] sm:$0xff] %vm1354_vm13, %v1343_v43 }
 0x2d2   :  { %2157 = vrot.lane.b32.xlu0 %v1834_v61, %s2639_s16 }
 0x2d4   :  { %v1452_v54 = vld [vmem:[#allocation3 + $0x71] sm:$0xff] }
 0x2d5   :  { %v1645_v24 = vld [vmem:[#allocation3 + $0x70] sm:$0xff]  ;;  %1491 = vrot.lane.b32.xlu1 %v1452_v54, %s2631_s29 }
 0x2d6   :  { %1683 = vrot.lane.b32.xlu0 %v1645_v24, %s2629_s22  ;;  %v1643_v32 = vld [vmem:[#allocation3 + $0x50] sm:$0xff]  ;;  %1436 = vst.msk [vmem:[#allocation4 + $0x38] sm:$0xff] %vm1354_vm13, %v1645_v24  ;;  %v1937_v17 = vld [vmem:[#allocation3 + $0x80] sm:$0xff] }
 0x2d7   :  { %1434 = vst.msk [vmem:[#allocation4 + $0x28] sm:$0xff] %vm1354_vm13, %v1643_v32  ;;  %v1935_v14 = vld [vmem:[#allocation3 + $0x60] sm:$0xff]  ;;  %v1549_v29 = vld [vmem:[#allocation3 + $0x72] sm:$0xff] }
 0x2d8   :  { %1435 = vst.msk [vmem:[#allocation4 + $0x30] sm:$0xff] %vm1354_vm13, %v1935_v14  ;;  %v1740_v3 = vld [vmem:[#allocation3 + $0x51] sm:$0xff]  ;;  %v2034_v40 = vld [vmem:[#allocation3 + $0x81] sm:$0xff] }
 0x2d9   :  { %1588 = vrot.lane.b32.xlu1 %v1549_v29, %s2632_s30  ;;  %v1837_v31 = vld [vmem:[#allocation3 + $0x52] sm:$0xff]  ;;  %v2131_v44 = vld [vmem:[#allocation3 + $0x82] sm:$0xff] }
 0x2da   :  { %1780 = vrot.lane.b32.xlu0 %v1452_v54, %s2635_s12  ;;  %v1451_v15 = vld [vmem:[#allocation3 + $0x61] sm:$0xff] }
 0x2db   :  { %v1548_v47 = vld [vmem:[#allocation3 + $0x62] sm:$0xff] }
 0x2dd   :  { %1973 = vrot.lane.b32.xlu1 %v1645_v24, %s2637_s1 }
 0x2de   :  { %1877 = vrot.lane.b32.xlu0 %v1549_v29, %s2640_s2 }
 0x2e1   :  { %2070 = vrot.lane.b32.xlu1 %v1452_v54, %s2638_s15 }
 0x2e2   :  { %1679 = vrot.lane.b32.xlu0 %v1643_v32, %s2629_s22 }
 0x2e5   :  { %2167 = vrot.lane.b32.xlu1 %v1549_v29, %s2639_s16 }
 0x2e6   :  { %1776 = vrot.lane.b32.xlu0 %v1740_v3, %s2635_s12 }
 0x2e9   :  { %1969 = vrot.lane.b32.xlu1 %v1643_v32, %s2637_s1 }
 0x2ea   :  { %1873 = vrot.lane.b32.xlu0 %v1837_v31, %s2640_s2 }
 0x2ed   :  { %2066 = vrot.lane.b32.xlu1 %v1740_v3, %s2638_s15 }
 0x2ee   :  { %1975 = vrot.lane.b32.xlu0 %v1937_v17, %s2637_s1 }
 0x2f1   :  { %1487 = vrot.lane.b32.xlu1 %v1740_v3, %s2631_s29 }
 0x2f2   :  { %2072 = vrot.lane.b32.xlu0 %v2034_v40, %s2638_s15 }
 0x2f5   :  { %2163 = vrot.lane.b32.xlu1 %v1837_v31, %s2639_s16 }
 0x2f6   :  { %2169 = vrot.lane.b32.xlu0 %v2131_v44, %s2639_s16 }
 0x2f9   :  { %1584 = vrot.lane.b32.xlu1 %v1837_v31, %s2632_s30 }
 0x2fa   :  { %1489 = vrot.lane.b32.xlu0 %v1451_v15, %s2631_s29 }
 0x2fd   :  { %1685 = vrot.lane.b32.xlu1 %v1937_v17, %s2629_s22 }
 0x2fe   :  { %1586 = vrot.lane.b32.xlu0 %v1548_v47, %s2632_s30 }
 0x301   :  { %1782 = vrot.lane.b32.xlu1 %v2034_v40, %s2635_s12 }
 0x302   :  { %1971 = vrot.lane.b32.xlu0 %v1935_v14, %s2637_s1 }
 0x305   :  { %1879 = vrot.lane.b32.xlu1 %v2131_v44, %s2640_s2 }
 0x306   :  { %2068 = vrot.lane.b32.xlu0 %v1451_v15, %s2638_s15 }
 0x307   :  { %v1484_v25 = vpop.permute.xlu1 %1483 }
 0x308   :  { %v3929_v6 = vpop.permute.xlu0 %1675  ;;  %1529 = vst.msk [vmem:[#allocation4 + $0x18] sm:$0xff] %vm1525_vm15, %v1484_v25  ;;  %v2544_v7 = vpop.f32.mrb[8].mxu0 }
 0x309   :  { %v1316_v28 = vadd.f32 %v2544_v7, %v3828_v30  ;;  %1681 = vrot.lane.b32.xlu1 %v1935_v14, %s2629_s22  ;;  %v1307_v46 = vpop.f32.mrb[9].mxu0 }
 0x30a   :  { %2165 = vrot.lane.b32.xlu0 %v1548_v47, %s2639_s16  ;;  %v1308_v59 = vadd.f32 %v3828_v30, %v1307_v46  ;;  %v2545_v18 = vpop.f32.mrb[10].mxu0 }
 0x30b   :  { %v1348_v21 = vmax.f32 %v1316_v28, 0.0  ;;  %v1319_v41 = vadd.f32 %v2545_v18, %v3828_v30  ;;  %v1581_v48 = vpop.permute.xlu1 %1580  ;;  %v1310_v51 = vpop.f32.mrb[11].mxu0 }
 0x30c   :  { %v1346_v45 = vmax.f32 %v1308_v59, 0.0  ;;  %1626 = vst.msk [vmem:[#allocation4 + $0x18] sm:$0xff] %vm1622_vm0, %v1581_v48  ;;  %v1311_v4 = vadd.f32 %v3828_v30, %v1310_v51  ;;  %v3939_v9 = vpop.permute.xlu0 %1772 }
 0x30d   :  { %1407 = vst.msk [vmem:[#allocation3 + $0xd1] sm:$0xff] %vm1354_vm13, %v1348_v21  ;;  %v1349_v33 = vmax.f32 %v1319_v41, 0.0  ;;  %1778 = vrot.lane.b32.xlu1 %v1451_v15, %s2635_s12 }
 0x30e   :  { %1405 = vst.msk [vmem:[#allocation3 + $0xb1] sm:$0xff] %vm1354_vm13, %v1346_v45  ;;  %v1347_v20 = vmax.f32 %v1311_v4, 0.0 }
 0x30f   :  { %1408 = vst.msk [vmem:[#allocation3 + $0xe1] sm:$0xff] %vm1354_vm13, %v1349_v33  ;;  %v3945_v22 = vpop.permute.xlu1 %1965 }
 0x310   :  { %1406 = vst.msk [vmem:[#allocation3 + $0xc1] sm:$0xff] %vm1354_vm13, %v1347_v20  ;;  %v3948_v55 = vpop.permute.xlu0 %1869 }
 0x311   :  { %1875 = vrot.lane.b32.xlu1 %v1548_v47, %s2640_s2 }
 0x313   :  { %v3951_v8 = vpop.permute.xlu1 %2062 }
 0x314   :  { %v1672_v0 = vpop.permute.xlu0 %1671  ;;  %v1456_v23 = vld [vmem:[#allocation3 + $0xd1] sm:$0xff] }
 0x315   :  { %v1649_v12 = vld [vmem:[#allocation3 + $0xd0] sm:$0xff]  ;;  %1720 = vst.msk [vmem:[#allocation4] sm:$0xff] %vm1719_vm2, %v1672_v0  ;;  %1499 = vrot.lane.b32.xlu1 %v1456_v23, %s2631_s29 }
 0x316   :  { %1691 = vrot.lane.b32.xlu0 %v1649_v12, %s2629_s22  ;;  %v1647_v53 = vld [vmem:[#allocation3 + $0xb0] sm:$0xff]  ;;  %1440 = vst.msk [vmem:[#allocation4 + $0x58] sm:$0xff] %vm1354_vm13, %v1649_v12  ;;  %v1941_v27 = vld [vmem:[#allocation3 + $0xe0] sm:$0xff] }
 0x317   :  { %1438 = vst.msk [vmem:[#allocation4 + $0x48] sm:$0xff] %vm1354_vm13, %v1647_v53  ;;  %v3958_v2 = vpop.permute.xlu1 %2159  ;;  %v3960_v52 = vld [vmem:[#allocation3 + $0xc0] sm:$0xff]  ;;  %1441 = vst.msk [vmem:[#allocation4 + $0x60] sm:$0xff] %vm1354_vm13, %v1941_v27  ;;  %v1553_v57 = vld [vmem:[#allocation3 + $0xd2] sm:$0xff] }
 0x318   :  { %v1769_v16 = vpop.permute.xlu0 %1768  ;;  %1439 = vst.msk [vmem:[#allocation4 + $0x50] sm:$0xff] %vm1354_vm13, %v3960_v52  ;;  %v1744_v37 = vld [vmem:[#allocation3 + $0xb1] sm:$0xff]  ;;  %v2038_v54 = vld [vmem:[#allocation3 + $0xe1] sm:$0xff] }
 0x319   :  { %1817 = vst.msk [vmem:[#allocation4] sm:$0xff] %vm1816_vm3, %v1769_v16  ;;  %1596 = vrot.lane.b32.xlu1 %v1553_v57, %s2632_s30  ;;  %v1841_v10 = vld [vmem:[#allocation3 + $0xb2] sm:$0xff]  ;;  %v1844_v39 = vld [vmem:[#allocation3 + $0xe2] sm:$0xff] }
 0x31a   :  { %1788 = vrot.lane.b32.xlu0 %v1456_v23, %s2635_s12  ;;  %v1745_v56 = vld [vmem:[#allocation3 + $0xc1] sm:$0xff] }
 0x31b   :  { %v1480_v49 = vpop.permute.xlu1 %1479  ;;  %v1842_v17 = vld [vmem:[#allocation3 + $0xc2] sm:$0xff] }
 0x31c   :  { %1527 = vst.msk [vmem:[#allocation4 + $0x8] sm:$0xff] %vm1525_vm15, %v1480_v49  ;;  %v1866_v61 = vpop.permute.xlu0 %1865 }
 0x31d   :  { %1914 = vst.msk [vmem:[#allocation4] sm:$0xff] %vm1913_vm4, %v1866_v61  ;;  %1981 = vrot.lane.b32.xlu1 %v1649_v12, %s2637_s1 }
 0x31e   :  { %1885 = vrot.lane.b32.xlu0 %v1553_v57, %s2640_s2 }
 0x31f   :  { %v1577_v1 = vpop.permute.xlu1 %1576 }
 0x320   :  { %1624 = vst.msk [vmem:[#allocation4 + $0x8] sm:$0xff] %vm1622_vm0, %v1577_v1  ;;  %v1968_v63 = vpop.permute.xlu0 %1967 }
 0x321   :  { %2078 = vrot.lane.b32.xlu1 %v1456_v23, %s2638_s15 }
 0x322   :  { %1687 = vrot.lane.b32.xlu0 %v1647_v53, %s2629_s22 }
 0x323   :  { %v1678_v13 = vpop.permute.xlu1 %1677 }
 0x324   :  { %1723 = vst.msk [vmem:[#allocation4 + $0x18] sm:$0xff] %vm1719_vm2, %v1678_v13  ;;  %v2065_v35 = vpop.permute.xlu0 %2064 }
 0x325   :  { %2175 = vrot.lane.b32.xlu1 %v1553_v57, %s2639_s16 }
 0x326   :  { %1784 = vrot.lane.b32.xlu0 %v1744_v37, %s2635_s12 }
 0x327   :  { %v1775_v60 = vpop.permute.xlu1 %1774 }
 0x328   :  { %1820 = vst.msk [vmem:[#allocation4 + $0x18] sm:$0xff] %vm1816_vm3, %v1775_v60  ;;  %v1486_v34 = vpop.permute.xlu0 %1485 }
 0x329   :  { %1530 = vst.msk [vmem:[#allocation4 + $0x20] sm:$0xff] %vm1525_vm15, %v1486_v34  ;;  %1495 = vrot.lane.b32.xlu1 %v1744_v37, %s2631_s29 }
 0x32a   :  { %1881 = vrot.lane.b32.xlu0 %v1841_v10, %s2640_s2 }
 0x32b   :  { %v1872_v11 = vpop.permute.xlu1 %1871 }
 0x32c   :  { %1917 = vst.msk [vmem:[#allocation4 + $0x18] sm:$0xff] %vm1913_vm4, %v1872_v11  ;;  %v2162_v38 = vpop.permute.xlu0 %2161 }
 0x32d   :  { %1592 = vrot.lane.b32.xlu1 %v1841_v10, %s2632_s30 }
 0x32e   :  { %1983 = vrot.lane.b32.xlu0 %v1941_v27, %s2637_s1 }
 0x32f   :  { %v1674_v62 = vpop.permute.xlu1 %1673 }
 0x330   :  { %1721 = vst.msk [vmem:[#allocation4 + $0x8] sm:$0xff] %vm1719_vm2, %v1674_v62  ;;  %v1583_v43 = vpop.permute.xlu0 %1582 }
 0x331   :  { %1627 = vst.msk [vmem:[#allocation4 + $0x20] sm:$0xff] %vm1622_vm0, %v1583_v43  ;;  %1693 = vrot.lane.b32.xlu1 %v1941_v27, %s2629_s22 }
 0x332   :  { %2080 = vrot.lane.b32.xlu0 %v2038_v54, %s2638_s15 }
 0x333   :  { %v1771_v24 = vpop.permute.xlu1 %1770 }
 0x334   :  { %1818 = vst.msk [vmem:[#allocation4 + $0x8] sm:$0xff] %vm1816_vm3, %v1771_v24  ;;  %v1482_v32 = vpop.permute.xlu0 %1481 }
 0x335   :  { %1528 = vst.msk [vmem:[#allocation4 + $0x10] sm:$0xff] %vm1525_vm15, %v1482_v32  ;;  %1790 = vrot.lane.b32.xlu1 %v2038_v54, %s2635_s12 }
 0x336   :  { %1501 = vrot.lane.b32.xlu0 %v2038_v54, %s2631_s29 }
 0x337   :  { %v1868_v14 = vpop.permute.xlu1 %1867 }
 0x338   :  { %1915 = vst.msk [vmem:[#allocation4 + $0x8] sm:$0xff] %vm1913_vm4, %v1868_v14  ;;  %v1579_v29 = vpop.permute.xlu0 %1578 }
 0x339   :  { %2013 = vst.msk [vmem:[#allocation4 + $0x8] sm:$0xff] %vm2011_vm5, %v3945_v22  ;;  %1887 = vrot.lane.b32.xlu1 %v1844_v39, %s2640_s2 }
 0x33a   :  { %1625 = vst.msk [vmem:[#allocation4 + $0x10] sm:$0xff] %vm1622_vm0, %v1579_v29  ;;  %2177 = vrot.lane.b32.xlu0 %v1844_v39, %s2639_s16 }
 0x33b   :  { %2110 = vst.msk [vmem:[#allocation4 + $0x8] sm:$0xff] %vm2108_vm6, %v3951_v8 }
 0x33c   :  { %1722 = vst.msk [vmem:[#allocation4 + $0x10] sm:$0xff] %vm1719_vm2, %v3929_v6  ;;  %v1964_v42 = vpop.permute.xlu0 %1963 }
 0x33d   :  { %2207 = vst.msk [vmem:[#allocation4 + $0x8] sm:$0xff] %vm2205_vm7, %v3958_v2  ;;  %1689 = vrot.lane.b32.xlu1 %v3960_v52, %s2629_s22 }
 0x33e   :  { %1819 = vst.msk [vmem:[#allocation4 + $0x10] sm:$0xff] %vm1816_vm3, %v3939_v9  ;;  %1598 = vrot.lane.b32.xlu0 %v1844_v39, %s2632_s30 }
 0x33f   :  { %1916 = vst.msk [vmem:[#allocation4 + $0x10] sm:$0xff] %vm1913_vm4, %v3948_v55 }
 0x340   :  { %2014 = vst.msk [vmem:[#allocation4 + $0x10] sm:$0xff] %vm2011_vm5, %v1968_v63  ;;  %2012 = vst.msk [vmem:[#allocation4] sm:$0xff] %vm2011_vm5, %v1964_v42  ;;  %v2061_v3 = vpop.permute.xlu0 %2060 }
 0x341   :  { %2111 = vst.msk [vmem:[#allocation4 + $0x10] sm:$0xff] %vm2108_vm6, %v2065_v35  ;;  %2109 = vst.msk [vmem:[#allocation4] sm:$0xff] %vm2108_vm6, %v2061_v3  ;;  %1786 = vrot.lane.b32.xlu1 %v1745_v56, %s2635_s12 }
 0x342   :  { %2208 = vst.msk [vmem:[#allocation4 + $0x10] sm:$0xff] %vm2205_vm7, %v2162_v38  ;;  %1497 = vrot.lane.b32.xlu0 %v1745_v56, %s2631_s29 }
 0x344   :  { %v2158_v31 = vpop.permute.xlu0 %2157  ;;  %v2548_v36 = vpop.f32.mrb[12].mxu0  ;;  %v2223_v48 = vld [vmem:[#allocation4 + $0x8] sm:$0xff] }
 0x345   :  { %2206 = vst.msk [vmem:[#allocation4] sm:$0xff] %vm2205_vm7, %v2158_v31  ;;  %v1332_v26 = vadd.f32 %v2548_v36, %v3828_v30  ;;  %1883 = vrot.lane.b32.xlu1 %v1842_v17, %s2640_s2  ;;  %v1323_v5 = vpop.f32.mrb[13].mxu0 }
 0x346   :  { %1594 = vrot.lane.b32.xlu0 %v1842_v17, %s2632_s30  ;;  %v1324_v40 = vadd.f32 %v3828_v30, %v1323_v5  ;;  %v2549_v44 = vpop.f32.mrb[14].mxu0  ;;  %v2043_v5 = vld [vmem:[#allocation3 + $0x131] sm:$0xff] }
 0x347   :  { %v1352_v15 = vmax.f32 %v1332_v26, 0.0  ;;  %v1335_v47 = vadd.f32 %v2549_v44, %v3828_v30  ;;  %v1492_v25 = vpop.permute.xlu1 %1491  ;;  %v1326_v6 = vpop.f32.mrb[15].mxu0 }
 0x348   :  { %v1350_v7 = vmax.f32 %v1324_v40, 0.0  ;;  %1533 = vst.msk [vmem:[#allocation4 + $0x38] sm:$0xff] %vm1525_vm15, %v1492_v25  ;;  %v1327_v28 = vadd.f32 %v3828_v30, %v1326_v6  ;;  %v4027_v46 = vpop.permute.xlu0 %1683 }
 0x349   :  { %1411 = vst.msk [vmem:[#allocation3 + $0x111] sm:$0xff] %vm1354_vm13, %v1352_v15  ;;  %v1353_v59 = vmax.f32 %v1335_v47, 0.0  ;;  %v2224_v10 = vld [vmem:[#allocation4 + $0x10] sm:$0xff] }
 0x34a   :  { %1979 = vrot.lane.b32.xlu0 %v3960_v52, %s2637_s1  ;;  %1409 = vst.msk [vmem:[#allocation3 + $0xf1] sm:$0xff] %vm1354_vm13, %v1350_v7  ;;  %v1351_v18 = vmax.f32 %v1327_v28, 0.0 }
 0x34b   :  { %1412 = vst.msk [vmem:[#allocation3 + $0x121] sm:$0xff] %vm1354_vm13, %v1353_v59  ;;  %v1589_v21 = vpop.permute.xlu1 %1588  ;;  %v2140_v59 = vld [vmem:[#allocation3 + $0x132] sm:$0xff] }
 0x34c   :  { %1410 = vst.msk [vmem:[#allocation3 + $0x101] sm:$0xff] %vm1354_vm13, %v1351_v18  ;;  %v4036_v41 = vpop.permute.xlu0 %1780  ;;  %v2222_v30 = vld [vmem:[#allocation4] sm:$0xff] }
 0x34d   :  { %1630 = vst.msk [vmem:[#allocation4 + $0x38] sm:$0xff] %vm1622_vm0, %v1589_v21  ;;  %v2238_v51 = vpack.c.bf16 %v2223_v48, %v2222_v30 }
 0x34e   :  { %2076 = vrot.lane.b32.xlu0 %v1745_v56, %s2638_s15 }
 0x34f   :  { %2560 = vmatprep.mubr.msk.bf16.mxu1 %vm2289_vm8, %v2238_v51  ;;  %v4040_v45 = vpop.permute.xlu1 %1973 }
 0x350   :  { %v4042_v4 = vpop.permute.xlu0 %1877  ;;  %v4044_v9 = vld [vmem:[#allocation3 + $0x111] sm:$0xff] }
 0x351   :  { %v4046_v33 = vld [vmem:[#allocation3 + $0x110] sm:$0xff]  ;;  %1507 = vrot.lane.b32.xlu1 %v4044_v9, %s2631_s29 }
 0x352   :  { %2173 = vrot.lane.b32.xlu0 %v1842_v17, %s2639_s16  ;;  %v1942_v20 = vld [vmem:[#allocation3 + $0xf0] sm:$0xff]  ;;  %1444 = vst.msk [vmem:[#allocation4 + $0x78] sm:$0xff] %vm1354_vm13, %v4046_v33  ;;  %v1654_v62 = vld [vmem:[#allocation3 + $0x120] sm:$0xff] }
 0x353   :  { %1442 = vst.msk [vmem:[#allocation4 + $0x68] sm:$0xff] %vm1354_vm13, %v1942_v20  ;;  %v4054_v22 = vpop.permute.xlu1 %2070  ;;  %v4056_v55 = vld [vmem:[#allocation3 + $0x101] sm:$0xff]  ;;  %v4058_v23 = vld [vmem:[#allocation3 + $0x112] sm:$0xff] }
 0x354   :  { %v1652_v8 = vld [vmem:[#allocation3 + $0x100] sm:$0xff]  ;;  %v1680_v0 = vpop.permute.xlu0 %1679  ;;  %v2039_v16 = vld [vmem:[#allocation3 + $0xf1] sm:$0xff] }
 0x355   :  { %1443 = vst.msk [vmem:[#allocation4 + $0x70] sm:$0xff] %vm1354_vm13, %v1652_v8  ;;  %1604 = vrot.lane.b32.xlu1 %v4058_v23, %s2632_s30  ;;  %v4068_v27 = vld [vmem:[#allocation3 + $0x102] sm:$0xff]  ;;  %v2136_v63 = vld [vmem:[#allocation3 + $0xf2] sm:$0xff] }
 0x356   :  { %1724 = vst.msk [vmem:[#allocation4 + $0x20] sm:$0xff] %vm1719_vm2, %v1680_v0  ;;  %1505 = vrot.lane.b32.xlu0 %v4056_v55, %s2631_s29  ;;  %v1751_v29 = vld [vmem:[#allocation3 + $0x121] sm:$0xff] }
 0x357   :  { %v4066_v12 = vpop.permute.xlu1 %2167  ;;  %v1848_v3 = vld [vmem:[#allocation3 + $0x122] sm:$0xff] }
 0x358   :  { %v1777_v53 = vpop.permute.xlu0 %1776 }
 0x359   :  { %1821 = vst.msk [vmem:[#allocation4 + $0x20] sm:$0xff] %vm1816_vm3, %v1777_v53  ;;  %1985 = vrot.lane.b32.xlu1 %v1942_v20, %s2637_s1 }
 0x35a   :  { %1602 = vrot.lane.b32.xlu0 %v4068_v27, %s2632_s30 }
 0x35b   :  { %v1970_v2 = vpop.permute.xlu1 %1969 }
 0x35c   :  { %2015 = vst.msk [vmem:[#allocation4 + $0x18] sm:$0xff] %vm2011_vm5, %v1970_v2  ;;  %v1874_v52 = vpop.permute.xlu0 %1873 }
 0x35d   :  { %1918 = vst.msk [vmem:[#allocation4 + $0x20] sm:$0xff] %vm1913_vm4, %v1874_v52  ;;  %2082 = vrot.lane.b32.xlu1 %v2039_v16, %s2638_s15 }
 0x35e   :  { %1695 = vrot.lane.b32.xlu0 %v1942_v20, %s2629_s22 }
 0x35f   :  { %v2067_v57 = vpop.permute.xlu1 %2066 }
 0x360   :  { %2112 = vst.msk [vmem:[#allocation4 + $0x18] sm:$0xff] %vm2108_vm6, %v2067_v57  ;;  %v1976_v49 = vpop.permute.xlu0 %1975 }
 0x361   :  { %1503 = vrot.lane.b32.xlu1 %v2039_v16, %s2631_s29 }
 0x362   :  { %1699 = vrot.lane.b32.xlu0 %v4046_v33, %s2629_s22 }
 0x363   :  { %v1488_v61 = vpop.permute.xlu1 %1487 }
 0x364   :  { %1531 = vst.msk [vmem:[#allocation4 + $0x28] sm:$0xff] %vm1525_vm15, %v1488_v61  ;;  %v2073_v1 = vpop.permute.xlu0 %2072 }
 0x365   :  { %2179 = vrot.lane.b32.xlu1 %v2136_v63, %s2639_s16 }
 0x366   :  { %1792 = vrot.lane.b32.xlu0 %v2039_v16, %s2635_s12 }
 0x367   :  { %v2164_v13 = vpop.permute.xlu1 %2163 }
 0x368   :  { %2209 = vst.msk [vmem:[#allocation4 + $0x18] sm:$0xff] %vm2205_vm7, %v2164_v13  ;;  %v2170_v35 = vpop.permute.xlu0 %2169 }
 0x369   :  { %1600 = vrot.lane.b32.xlu1 %v2136_v63, %s2632_s30 }
 0x36a   :  { %1796 = vrot.lane.b32.xlu0 %v4044_v9, %s2635_s12 }
 0x36b   :  { %v1585_v37 = vpop.permute.xlu1 %1584 }
 0x36c   :  { %1628 = vst.msk [vmem:[#allocation4 + $0x28] sm:$0xff] %vm1622_vm0, %v1585_v37  ;;  %v1490_v60 = vpop.permute.xlu0 %1489 }
 0x36d   :  { %1532 = vst.msk [vmem:[#allocation4 + $0x30] sm:$0xff] %vm1525_vm15, %v1490_v60  ;;  %1697 = vrot.lane.b32.xlu1 %v1652_v8, %s2629_s22 }
 0x36e   :  { %1889 = vrot.lane.b32.xlu0 %v2136_v63, %s2640_s2 }
 0x36f   :  { %v1686_v34 = vpop.permute.xlu1 %1685  ;;  %v2225_v11 = vld [vmem:[#allocation4 + $0x18] sm:$0xff] }
 0x370   :  { %1727 = vst.msk [vmem:[#allocation4 + $0x38] sm:$0xff] %vm1719_vm2, %v1686_v34  ;;  %v1587_v38 = vpop.permute.xlu0 %1586  ;;  %v2239_v43 = vpack.c.bf16 %v2225_v11, %v2224_v10 }
 0x371   :  { %1629 = vst.msk [vmem:[#allocation4 + $0x30] sm:$0xff] %vm1622_vm0, %v1587_v38  ;;  %1701 = vrot.lane.b32.xlu1 %v1654_v62, %s2629_s22 }
 0x372   :  { %1893 = vrot.lane.b32.xlu0 %v4058_v23, %s2640_s2  ;;  %1726 = vst.msk [vmem:[#allocation4 + $0x30] sm:$0xff] %vm1719_vm2, %v4027_v46  ;;  %2561 = vmatmul.mubr.msk.bf16.vlgmr.msra.gmra.mrb[0].mxu1 %vm2289_vm8, %v2239_v43 }
 0x373   :  { %1823 = vst.msk [vmem:[#allocation4 + $0x30] sm:$0xff] %vm1816_vm3, %v4036_v41  ;;  %v1783_v54 = vpop.permute.xlu1 %1782 }
 0x374   :  { %1920 = vst.msk [vmem:[#allocation4 + $0x30] sm:$0xff] %vm1913_vm4, %v4042_v4  ;;  %v1972_v24 = vpop.permute.xlu0 %1971 }
 0x375   :  { %1824 = vst.msk [vmem:[#allocation4 + $0x38] sm:$0xff] %vm1816_vm3, %v1783_v54  ;;  %1794 = vrot.lane.b32.xlu1 %v4056_v55, %s2635_s12 }
 0x376   :  { %2018 = vst.msk [vmem:[#allocation4 + $0x30] sm:$0xff] %vm2011_vm5, %v1976_v49  ;;  %2016 = vst.msk [vmem:[#allocation4 + $0x20] sm:$0xff] %vm2011_vm5, %v1972_v24  ;;  %1987 = vrot.lane.b32.xlu0 %v1652_v8, %s2637_s1 }
 0x377   :  { %2115 = vst.msk [vmem:[#allocation4 + $0x30] sm:$0xff] %vm2108_vm6, %v2073_v1  ;;  %v1880_v32 = vpop.permute.xlu1 %1879 }
 0x378   :  { %2212 = vst.msk [vmem:[#allocation4 + $0x30] sm:$0xff] %vm2205_vm7, %v2170_v35  ;;  %v2069_v14 = vpop.permute.xlu0 %2068 }
 0x379   :  { %1921 = vst.msk [vmem:[#allocation4 + $0x38] sm:$0xff] %vm1913_vm4, %v1880_v32  ;;  %1798 = vrot.lane.b32.xlu1 %v1751_v29, %s2635_s12 }
 0x37a   :  { %2019 = vst.msk [vmem:[#allocation4 + $0x38] sm:$0xff] %vm2011_vm5, %v3915_v50  ;;  %1991 = vrot.lane.b32.xlu0 %v1654_v62, %s2637_s1 }
 0x37b   :  { %2113 = vst.msk [vmem:[#allocation4 + $0x20] sm:$0xff] %vm2108_vm6, %v2069_v14  ;;  %2116 = vst.msk [vmem:[#allocation4 + $0x38] sm:$0xff] %vm2108_vm6, %v3919_v58  ;;  %v1682_v39 = vpop.permute.xlu1 %1681 }
 0x37c   :  { %2213 = vst.msk [vmem:[#allocation4 + $0x38] sm:$0xff] %vm2205_vm7, %v3925_v19  ;;  %v2166_v42 = vpop.permute.xlu0 %2165  ;;  %v1946_v19 = vld [vmem:[#allocation3 + $0x130] sm:$0xff] }
 0x37d   :  { %1725 = vst.msk [vmem:[#allocation4 + $0x28] sm:$0xff] %vm1719_vm2, %v1682_v39  ;;  %1891 = vrot.lane.b32.xlu1 %v4068_v27, %s2640_s2 }
 0x37e   :  { %2210 = vst.msk [vmem:[#allocation4 + $0x20] sm:$0xff] %vm2205_vm7, %v2166_v42  ;;  %2084 = vrot.lane.b32.xlu0 %v4056_v55, %s2638_s15 }
 0x37f   :  { %v1779_v50 = vpop.permute.xlu1 %1778  ;;  %v2228_v6 = vld [vmem:[#allocation4 + $0x30] sm:$0xff] }
 0x380   :  { %1822 = vst.msk [vmem:[#allocation4 + $0x28] sm:$0xff] %vm1816_vm3, %v1779_v50 }
 0x381   :  { %1895 = vrot.lane.b32.xlu1 %v1848_v3, %s2640_s2 }
 0x382   :  { %2088 = vrot.lane.b32.xlu0 %v1751_v29, %s2638_s15 }
 0x383   :  { %v1876_v58 = vpop.permute.xlu1 %1875  ;;  %v2229_v26 = vld [vmem:[#allocation4 + $0x38] sm:$0xff] }
 0x384   :  { %1919 = vst.msk [vmem:[#allocation4 + $0x28] sm:$0xff] %vm1913_vm4, %v1876_v58  ;;  %v2241_v7 = vpack.c.bf16 %v2229_v26, %v2228_v6 }
 0x385   :  { %2017 = vst.msk [vmem:[#allocation4 + $0x28] sm:$0xff] %vm2011_vm5, %v4040_v45  ;;  %1989 = vrot.lane.b32.xlu1 %v4046_v33, %s2637_s1  ;;  %v2226_v40 = vld [vmem:[#allocation4 + $0x20] sm:$0xff] }
 0x386   :  { %2181 = vrot.lane.b32.xlu0 %v4068_v27, %s2639_s16  ;;  %2114 = vst.msk [vmem:[#allocation4 + $0x28] sm:$0xff] %vm2108_vm6, %v4054_v22 }
 0x387   :  { %2211 = vst.msk [vmem:[#allocation4 + $0x28] sm:$0xff] %vm2205_vm7, %v4066_v12  ;;  %v1500_v56 = vpop.permute.xlu1 %1499 }
 0x388   :  { %v1692_v31 = vpop.permute.xlu0 %1691  ;;  %1537 = vst.msk [vmem:[#allocation4 + $0x58] sm:$0xff] %vm1525_vm15, %v1500_v56 }
 0x389   :  { %1993 = vrot.lane.b32.xlu1 %v1946_v19, %s2637_s1 }
 0x38a   :  { %2185 = vrot.lane.b32.xlu0 %v1848_v3, %s2639_s16 }
 0x38b   :  { %v1597_v36 = vpop.permute.xlu1 %1596 }
 0x38c   :  { %v1789_v17 = vpop.permute.xlu0 %1788  ;;  %1634 = vst.msk [vmem:[#allocation4 + $0x58] sm:$0xff] %vm1622_vm0, %v1597_v36 }
 0x38d   :  { %2086 = vrot.lane.b32.xlu1 %v4044_v9, %s2638_s15 }
 0x38e   :  { %v2227_v44 = vld [vmem:[#allocation4 + $0x28] sm:$0xff] }
 0x38f   :  { %v1982_v15 = vpop.permute.xlu1 %1981  ;;  %v2240_v25 = vpack.c.bf16 %v2227_v44, %v2226_v40 }
 0x390   :  { %v1886_v47 = vpop.permute.xlu0 %1885 }
 0x391   :  { %2090 = vrot.lane.b32.xlu1 %v2043_v5, %s2638_s15  ;;  %2564 = vmatprep.mubr.msk.bf16.mxu1 %vm2289_vm8, %v2240_v25 }
 0x392   :  { %2565 = vmatmul.mubr.msk.bf16.gmra.mrb[4].mxu1 %vm2289_vm8, %v2241_v7 }
 0x393   :  { %v2079_v28 = vpop.permute.xlu1 %2078 }
 0x394   :  { %v1688_v46 = vpop.permute.xlu0 %1687 }
 0x395   :  { %1728 = vst.msk [vmem:[#allocation4 + $0x40] sm:$0xff] %vm1719_vm2, %v1688_v46  ;;  %2183 = vrot.lane.b32.xlu1 %v4058_v23, %s2639_s16 }
 0x397   :  { %v2176_v18 = vpop.permute.xlu1 %2175 }
 0x398   :  { %v1785_v21 = vpop.permute.xlu0 %1784 }
 0x399   :  { %1825 = vst.msk [vmem:[#allocation4 + $0x40] sm:$0xff] %vm1816_vm3, %v1785_v21  ;;  %2187 = vrot.lane.b32.xlu1 %v2140_v59, %s2639_s16 }
 0x39b   :  { %v1496_v41 = vpop.permute.xlu1 %1495 }
 0x39c   :  { %v1882_v30 = vpop.permute.xlu0 %1881  ;;  %1535 = vst.msk [vmem:[#allocation4 + $0x48] sm:$0xff] %vm1525_vm15, %v1496_v41  ;;  %v2490_v41 = vld [vmem:[%s4238_s4] ss:$0 sm:$0xff]  ;;  %s2641_s4 = smov [#allocation5]  }
 0x39d   :  { %1922 = vst.msk [vmem:[#allocation4 + $0x40] sm:$0xff] %vm1913_vm4, %v1882_v30  ;;  %s2470_s29 = sshll.u32 %s2641_s4, 4  ;;  %s2471_s29 = int_to_ptr.vmem [resolvable:$true] %s2470_s29 }
 0x39e   :  { %s2602_s30 = scalar_lea.vmem %s2471_s29, 128  ;;  %p2607_p1 = scmp.lt.s32.totalorder %s2471_s29, %s2471_s29 }
 0x39f   :  { %v1593_v48 = vpop.permute.xlu1 %1592  ;;  %p2603_p0 = scmp.ne.s32.totalorder %s2471_s29, %s2602_s30  ;;  %p2608_p2 = scmp.lt.s32.totalorder %s2602_s30, %s2602_s30 }
 0x3a0   :  { %v1984_v51 = vpop.permute.xlu0 %1983  ;;  %1632 = vst.msk [vmem:[#allocation4 + $0x48] sm:$0xff] %vm1622_vm0, %v1593_v48 }
 0x3a1   :  { %p2609_p3 = por %p2608_p2, %p2607_p1 }
 0x3a3   :  { %v1694_v45 = vpop.permute.xlu1 %1693  ;;  %p2610_p4 = pnand %p2609_p3, %p2603_p0 }
 0x3a4   :  { %v2081_v4 = vpop.permute.xlu0 %2080  ;;  %1731 = vst.msk [vmem:[#allocation4 + $0x58] sm:$0xff] %vm1719_vm2, %v1694_v45 }
 0x3a7   :  { %v1791_v9 = vpop.permute.xlu1 %1790 }
 0x3a8   :  { %v1502_v33 = vpop.permute.xlu0 %1501  ;;  %1828 = vst.msk [vmem:[#allocation4 + $0x58] sm:$0xff] %vm1816_vm3, %v1791_v9 }
 0x3a9   :  { %1538 = vst.msk [vmem:[#allocation4 + $0x60] sm:$0xff] %vm1525_vm15, %v1502_v33 }
 0x3ab   :  { %v1888_v20 = vpop.permute.xlu1 %1887 }
 0x3ac   :  { %v2178_v22 = vpop.permute.xlu0 %2177  ;;  %1925 = vst.msk [vmem:[#allocation4 + $0x58] sm:$0xff] %vm1913_vm4, %v1888_v20 }
 0x3af   :  { %v1690_v55 = vpop.permute.xlu1 %1689 }
 0x3b0   :  { %v1599_v8 = vpop.permute.xlu0 %1598  ;;  %1729 = vst.msk [vmem:[#allocation4 + $0x48] sm:$0xff] %vm1719_vm2, %v1690_v55 }
 0x3b1   :  { %1635 = vst.msk [vmem:[#allocation4 + $0x60] sm:$0xff] %vm1622_vm0, %v1599_v8 }
 0x3b3   :  { %v1787_v0 = vpop.permute.xlu1 %1786 }
 0x3b4   :  { %v1498_v23 = vpop.permute.xlu0 %1497  ;;  %1826 = vst.msk [vmem:[#allocation4 + $0x48] sm:$0xff] %vm1816_vm3, %v1787_v0 }
 0x3b5   :  { %1536 = vst.msk [vmem:[#allocation4 + $0x50] sm:$0xff] %vm1525_vm15, %v1498_v23 }
 0x3b7   :  { %v1884_v12 = vpop.permute.xlu1 %1883 }
 0x3b8   :  { %v1595_v53 = vpop.permute.xlu0 %1594  ;;  %1923 = vst.msk [vmem:[#allocation4 + $0x48] sm:$0xff] %vm1913_vm4, %v1884_v12 }
 0x3b9   :  { %1633 = vst.msk [vmem:[#allocation4 + $0x50] sm:$0xff] %vm1622_vm0, %v1595_v53 }
 0x3ba   :  { %2021 = vst.msk [vmem:[#allocation4 + $0x48] sm:$0xff] %vm2011_vm5, %v1982_v15 }
 0x3bb   :  { %1730 = vst.msk [vmem:[#allocation4 + $0x50] sm:$0xff] %vm1719_vm2, %v1692_v31 }
 0x3bc   :  { %2118 = vst.msk [vmem:[#allocation4 + $0x48] sm:$0xff] %vm2108_vm6, %v2079_v28  ;;  %v1980_v27 = vpop.permute.xlu0 %1979 }
 0x3bd   :  { %1827 = vst.msk [vmem:[#allocation4 + $0x50] sm:$0xff] %vm1816_vm3, %v1789_v17 }
 0x3be   :  { %2215 = vst.msk [vmem:[#allocation4 + $0x48] sm:$0xff] %vm2205_vm7, %v2176_v18 }
 0x3bf   :  { %1924 = vst.msk [vmem:[#allocation4 + $0x50] sm:$0xff] %vm1913_vm4, %v1886_v47 }
 0x3c0   :  { %2022 = vst.msk [vmem:[#allocation4 + $0x50] sm:$0xff] %vm2011_vm5, %v1984_v51  ;;  %2020 = vst.msk [vmem:[#allocation4 + $0x40] sm:$0xff] %vm2011_vm5, %v1980_v27  ;;  %v2077_v2 = vpop.permute.xlu0 %2076 }
 0x3c1   :  { %2119 = vst.msk [vmem:[#allocation4 + $0x50] sm:$0xff] %vm2108_vm6, %v2081_v4  ;;  %2117 = vst.msk [vmem:[#allocation4 + $0x40] sm:$0xff] %vm2108_vm6, %v2077_v2 }
 0x3c2   :  { %2216 = vst.msk [vmem:[#allocation4 + $0x50] sm:$0xff] %vm2205_vm7, %v2178_v22 }
 0x3c3   :  { %v1508_v52 = vpop.permute.xlu1 %1507 }
 0x3c4   :  { %v2174_v16 = vpop.permute.xlu0 %2173  ;;  %1541 = vst.msk [vmem:[#allocation4 + $0x78] sm:$0xff] %vm1525_vm15, %v1508_v52 }
 0x3c5   :  { %2214 = vst.msk [vmem:[#allocation4 + $0x40] sm:$0xff] %vm2205_vm7, %v2174_v16  ;;  %v2231_v13 = vld [vmem:[#allocation4 + $0x48] sm:$0xff] }
 0x3c7   :  { %v1605_v57 = vpop.permute.xlu1 %1604 }
 0x3c8   :  { %v1506_v49 = vpop.permute.xlu0 %1505  ;;  %1638 = vst.msk [vmem:[#allocation4 + $0x78] sm:$0xff] %vm1622_vm0, %v1605_v57 }
 0x3c9   :  { %1540 = vst.msk [vmem:[#allocation4 + $0x70] sm:$0xff] %vm1525_vm15, %v1506_v49  ;;  %v2232_v32 = vld [vmem:[#allocation4 + $0x50] sm:$0xff] }
 0x3cb   :  { %v1986_v61 = vpop.permute.xlu1 %1985 }
 0x3cc   :  { %v1603_v1 = vpop.permute.xlu0 %1602  ;;  %v2230_v63 = vld [vmem:[#allocation4 + $0x40] sm:$0xff]  ;;  %2023 = vst.msk [vmem:[#allocation4 + $0x58] sm:$0xff] %vm2011_vm5, %v1986_v61 }
 0x3cd   :  { %1637 = vst.msk [vmem:[#allocation4 + $0x70] sm:$0xff] %vm1622_vm0, %v1603_v1  ;;  %v2242_v35 = vpack.c.bf16 %v2231_v13, %v2230_v63 }
 0x3cf   :  { %2568 = vmatprep.mubr.msk.bf16.mxu1 %vm2289_vm8, %v2242_v35  ;;  %v2083_v37 = vpop.permute.xlu1 %2082 }
 0x3d0   :  { %v1696_v60 = vpop.permute.xlu0 %1695  ;;  %2120 = vst.msk [vmem:[#allocation4 + $0x58] sm:$0xff] %vm2108_vm6, %v2083_v37 }
 0x3d1   :  { %1732 = vst.msk [vmem:[#allocation4 + $0x60] sm:$0xff] %vm1719_vm2, %v1696_v60 }
 0x3d3   :  { %v1504_v34 = vpop.permute.xlu1 %1503 }
 0x3d4   :  { %v1700_v10 = vpop.permute.xlu0 %1699  ;;  %1539 = vst.msk [vmem:[#allocation4 + $0x68] sm:$0xff] %vm1525_vm15, %v1504_v34 }
 0x3d5   :  { %1734 = vst.msk [vmem:[#allocation4 + $0x70] sm:$0xff] %vm1719_vm2, %v1700_v10 }
 0x3d7   :  { %v2180_v11 = vpop.permute.xlu1 %2179 }
 0x3d8   :  { %v1793_v38 = vpop.permute.xlu0 %1792  ;;  %2217 = vst.msk [vmem:[#allocation4 + $0x58] sm:$0xff] %vm2205_vm7, %v2180_v11 }
 0x3d9   :  { %1829 = vst.msk [vmem:[#allocation4 + $0x60] sm:$0xff] %vm1816_vm3, %v1793_v38 }
 0x3db   :  { %v1601_v62 = vpop.permute.xlu1 %1600 }
 0x3dc   :  { %v1797_v43 = vpop.permute.xlu0 %1796  ;;  %1636 = vst.msk [vmem:[#allocation4 + $0x68] sm:$0xff] %vm1622_vm0, %v1601_v62 }
 0x3dd   :  { %1831 = vst.msk [vmem:[#allocation4 + $0x70] sm:$0xff] %vm1816_vm3, %v1797_v43 }
 0x3df   :  { %v1698_v54 = vpop.permute.xlu1 %1697  ;;  %v2233_v14 = vld [vmem:[#allocation4 + $0x58] sm:$0xff] }
 0x3e0   :  { %v1890_v24 = vpop.permute.xlu0 %1889  ;;  %1733 = vst.msk [vmem:[#allocation4 + $0x68] sm:$0xff] %vm1719_vm2, %v1698_v54  ;;  %v2243_v29 = vpack.c.bf16 %v2233_v14, %v2232_v32 }
 0x3e1   :  { %1926 = vst.msk [vmem:[#allocation4 + $0x60] sm:$0xff] %vm1913_vm4, %v1890_v24 }
 0x3e2   :  { %2569 = vmatmul.mubr.msk.bf16.gmra.mrb[8].mxu1 %vm2289_vm8, %v2243_v29 }
 0x3e3   :  { %v1702_v39 = vpop.permute.xlu1 %1701 }
 0x3e4   :  { %v1894_v42 = vpop.permute.xlu0 %1893  ;;  %1735 = vst.msk [vmem:[#allocation4 + $0x78] sm:$0xff] %vm1719_vm2, %v1702_v39 }
 0x3e5   :  { %1928 = vst.msk [vmem:[#allocation4 + $0x70] sm:$0xff] %vm1913_vm4, %v1894_v42 }
 0x3e7   :  { %v1795_v50 = vpop.permute.xlu1 %1794 }
 0x3e8   :  { %v1988_v3 = vpop.permute.xlu0 %1987  ;;  %1830 = vst.msk [vmem:[#allocation4 + $0x68] sm:$0xff] %vm1816_vm3, %v1795_v50 }
 0x3e9   :  { %2024 = vst.msk [vmem:[#allocation4 + $0x60] sm:$0xff] %vm2011_vm5, %v1988_v3 }
 0x3eb   :  { %v1799_v58 = vpop.permute.xlu1 %1798 }
 0x3ec   :  { %v1992_v19 = vpop.permute.xlu0 %1991  ;;  %1832 = vst.msk [vmem:[#allocation4 + $0x78] sm:$0xff] %vm1816_vm3, %v1799_v58 }
 0x3ed   :  { %2026 = vst.msk [vmem:[#allocation4 + $0x70] sm:$0xff] %vm2011_vm5, %v1992_v19 }
 0x3ef   :  { %v1892_v56 = vpop.permute.xlu1 %1891 }
 0x3f0   :  { %v2085_v31 = vpop.permute.xlu0 %2084  ;;  %1927 = vst.msk [vmem:[#allocation4 + $0x68] sm:$0xff] %vm1913_vm4, %v1892_v56 }
 0x3f1   :  { %2121 = vst.msk [vmem:[#allocation4 + $0x60] sm:$0xff] %vm2108_vm6, %v2085_v31 }
 0x3f3   :  { %v1896_v36 = vpop.permute.xlu1 %1895 }
 0x3f4   :  { %v2089_v17 = vpop.permute.xlu0 %2088  ;;  %1929 = vst.msk [vmem:[#allocation4 + $0x78] sm:$0xff] %vm1913_vm4, %v1896_v36 }
 0x3f5   :  { %2123 = vst.msk [vmem:[#allocation4 + $0x70] sm:$0xff] %vm2108_vm6, %v2089_v17 }
 0x3f7   :  { %v1990_v26 = vpop.permute.xlu1 %1989 }
 0x3f8   :  { %v2182_v5 = vpop.permute.xlu0 %2181  ;;  %2025 = vst.msk [vmem:[#allocation4 + $0x68] sm:$0xff] %vm2011_vm5, %v1990_v26 }
 0x3f9   :  { %2218 = vst.msk [vmem:[#allocation4 + $0x60] sm:$0xff] %vm2205_vm7, %v2182_v5 }
 0x3fb   :  { %v1994_v40 = vpop.permute.xlu1 %1993 }
 0x3fc   :  { %v2186_v44 = vpop.permute.xlu0 %2185  ;;  %2027 = vst.msk [vmem:[#allocation4 + $0x78] sm:$0xff] %vm2011_vm5, %v1994_v40 }
 0x3fd   :  { %2220 = vst.msk [vmem:[#allocation4 + $0x70] sm:$0xff] %vm2205_vm7, %v2186_v44 }
 0x3ff   :  { %v2087_v15 = vpop.permute.xlu1 %2086 }
 0x400   :  { %2122 = vst.msk [vmem:[#allocation4 + $0x68] sm:$0xff] %vm2108_vm6, %v2087_v15  ;;  %v2234_v7 = vld [vmem:[#allocation4 + $0x60] sm:$0xff] }
 0x403   :  { %v2091_v47 = vpop.permute.xlu1 %2090 }
 0x404   :  { %2124 = vst.msk [vmem:[#allocation4 + $0x78] sm:$0xff] %vm2108_vm6, %v2091_v47  ;;  %v2236_v59 = vld [vmem:[#allocation4 + $0x70] sm:$0xff] }
 0x407   :  { %v2184_v25 = vpop.permute.xlu1 %2183 }
 0x408   :  { %2219 = vst.msk [vmem:[#allocation4 + $0x68] sm:$0xff] %vm2205_vm7, %v2184_v25 }
 0x40b   :  { %v2188_v6 = vpop.permute.xlu1 %2187 }
 0x40c   :  { %2221 = vst.msk [vmem:[#allocation4 + $0x78] sm:$0xff] %vm2205_vm7, %v2188_v6 }
 0x40f   :  { %v2235_v28 = vld [vmem:[#allocation4 + $0x68] sm:$0xff] }
 0x410   :  { %v2244_v46 = vpack.c.bf16 %v2235_v28, %v2234_v7 }
 0x412   :  { %2572 = vmatprep.mubr.msk.bf16.mxu1 %vm2289_vm8, %v2244_v46 }
 0x413   :  { %v2237_v18 = vld [vmem:[#allocation4 + $0x78] sm:$0xff] }
 0x414   :  { %v2245_v21 = vpack.c.bf16 %v2237_v18, %v2236_v59 }
 0x416   :  { %2573 = vmatmul.mubr.msk.bf16.gmra.mrb[12].mxu1 %vm2289_vm8, %v2245_v21 }
 0x445   :  { %v2562_v30 = vpop.f32.mrb[0].mxu1 }
 0x446   :  { %v2352_v48 = vpop.f32.mrb[1].mxu1  ;;  %v2361_v20 = vadd.f32 %v2562_v30, %v2490_v41 }
 0x447   :  { %v2353_v51 = vadd.f32 %v2490_v41, %v2352_v48  ;;  %v2563_v45 = vpop.f32.mrb[2].mxu1 }
 0x448   :  { %v2355_v4 = vpop.f32.mrb[3].mxu1  ;;  %v2417_v55 = vmax.f32 %v2361_v20, 0.0  ;;  %v2364_v8 = vadd.f32 %v2563_v45, %v2490_v41 }
 0x449   :  { %v2415_v9 = vmax.f32 %v2353_v51, 0.0  ;;  %v2356_v33 = vadd.f32 %v2490_v41, %v2355_v4 }
 0x44a   :  { %v2418_v0 = vmax.f32 %v2364_v8, 0.0 }
 0x44b   :  { %2431 = vxpose.xlu0.b32.start [1/16] (narrow) %v2415_v9, 8  ;;  %v2416_v22 = vmax.f32 %v2356_v33, 0.0 }
 0x44f   :  { %2432 = vxpose.xlu0.b32.cont [2/16] (narrow) %v2416_v22, 8 }
 0x453   :  { %2433 = vxpose.xlu0.b32.cont [3/16] (narrow) %v2417_v55, 8 }
 0x457   :  { %2434 = vxpose.xlu0.b32.cont [4/16] (narrow) %v2418_v0, 8 }
 0x465   :  { %v2566_v23 = vpop.f32.mrb[4].mxu1 }
 0x466   :  { %v2368_v12 = vpop.f32.mrb[5].mxu1  ;;  %v2377_v57 = vadd.f32 %v2566_v23, %v2490_v41 }
 0x467   :  { %v2369_v53 = vadd.f32 %v2490_v41, %v2368_v12  ;;  %v2567_v27 = vpop.f32.mrb[6].mxu1 }
 0x468   :  { %v2371_v2 = vpop.f32.mrb[7].mxu1  ;;  %v2421_v61 = vmax.f32 %v2377_v57, 0.0  ;;  %v2380_v1 = vadd.f32 %v2567_v27, %v2490_v41 }
 0x469   :  { %v2419_v52 = vmax.f32 %v2369_v53, 0.0  ;;  %v2372_v16 = vadd.f32 %v2490_v41, %v2371_v2 }
 0x46a   :  { %v2422_v63 = vmax.f32 %v2380_v1, 0.0 }
 0x46b   :  { %2435 = vxpose.xlu0.b32.cont [5/16] (narrow) %v2419_v52, 8  ;;  %v2420_v49 = vmax.f32 %v2372_v16, 0.0 }
 0x46f   :  { %2436 = vxpose.xlu0.b32.cont [6/16] (narrow) %v2420_v49, 8 }
 0x473   :  { %2437 = vxpose.xlu0.b32.cont [7/16] (narrow) %v2421_v61, 8 }
 0x477   :  { %2438 = vxpose.xlu0.b32.cont [8/16] (narrow) %v2422_v63, 8 }
 0x4b5   :  { %v2570_v13 = vpop.f32.mrb[8].mxu1 }
 0x4b6   :  { %v2384_v35 = vpop.f32.mrb[9].mxu1  ;;  %v2393_v38 = vadd.f32 %v2570_v13, %v2490_v41 }
 0x4b7   :  { %v2385_v37 = vadd.f32 %v2490_v41, %v2384_v35  ;;  %v2571_v60 = vpop.f32.mrb[10].mxu1 }
 0x4b8   :  { %v2387_v34 = vpop.f32.mrb[11].mxu1  ;;  %v2425_v43 = vmax.f32 %v2393_v38, 0.0  ;;  %v2396_v54 = vadd.f32 %v2571_v60, %v2490_v41 }
 0x4b9   :  { %v2423_v10 = vmax.f32 %v2385_v37, 0.0  ;;  %v2388_v11 = vadd.f32 %v2490_v41, %v2387_v34 }
 0x4ba   :  { %v2426_v24 = vmax.f32 %v2396_v54, 0.0 }
 0x4bb   :  { %2439 = vxpose.xlu0.b32.cont [9/16] (narrow) %v2423_v10, 8  ;;  %v2424_v62 = vmax.f32 %v2388_v11, 0.0 }
 0x4bf   :  { %2440 = vxpose.xlu0.b32.cont [10/16] (narrow) %v2424_v62, 8 }
 0x4c3   :  { %2441 = vxpose.xlu0.b32.cont [11/16] (narrow) %v2425_v43, 8 }
 0x4c7   :  { %2442 = vxpose.xlu0.b32.cont [12/16] (narrow) %v2426_v24, 8 }
 0x4e9   :  { %v2574_v32 = vpop.f32.mrb[12].mxu1 }
 0x4ea   :  { %v2400_v14 = vpop.f32.mrb[13].mxu1  ;;  %v2409_v58 = vadd.f32 %v2574_v32, %v2490_v41 }
 0x4eb   :  { %v2401_v29 = vadd.f32 %v2490_v41, %v2400_v14  ;;  %v2575_v39 = vpop.f32.mrb[14].mxu1 }
 0x4ec   :  { %v2403_v42 = vpop.f32.mrb[15].mxu1  ;;  %v2429_v56 = vmax.f32 %v2409_v58, 0.0  ;;  %v2412_v31 = vadd.f32 %v2575_v39, %v2490_v41 }
 0x4ed   :  { %v2427_v50 = vmax.f32 %v2401_v29, 0.0  ;;  %v2404_v3 = vadd.f32 %v2490_v41, %v2403_v42 }
 0x4ee   :  { %v2430_v36 = vmax.f32 %v2412_v31, 0.0 }
 0x4ef   :  { %2443 = vxpose.xlu0.b32.cont [13/16] (narrow) %v2427_v50, 8  ;;  %v2428_v19 = vmax.f32 %v2404_v3, 0.0 }
 0x4f3   :  { %2444 = vxpose.xlu0.b32.cont [14/16] (narrow) %v2428_v19, 8 }
 0x4f7   :  { %2445 = vxpose.xlu0.b32.cont [15/16] (narrow) %v2429_v56, 8 }
 0x4fb   :  { %2446 = vxpose.xlu0.b32.end [16/16] (narrow) %v2430_v36, 8 }
 0x53f   :  { %v2447_v17 = vpop.trf.xlu0 }
 0x540   :  { %2463 = vst [vmem:[#allocation5] sm:$0xff] %v2447_v17 }
 0x541   :  { %2613 = shalt.err (!%p2610_p4)
}
 0x542   :  { %s2614_s8 = scalar_lea.hbm %s4239_s5, 128 }
 0x543   :  { %p2615_p5 = scmp.ne.s32.totalorder %s4239_s5, %s2614_s8  ;;  %p2618_p6 = scmp.lt.u32.totalorder %s2614_s8, %s4239_s5 }
 0x545   :  { %p2620_p7 = pnand %p2618_p6, %p2615_p5 }
 0x547   :  { %2623 = shalt.err (!%p2620_p7)
}
 0x548   :  { %2473 = dma.vmem_to_hbm [thread:$0]  %s2471_s29, 128, %s4239_s5, [#allocation6]  }
 0x549   :  { %2624 = dma.done.wait [#allocation6], 128  }
 0x54a   :  { %2625 = vsyncadd [#allocation6], 4294967168 }
 0x54b   :  { %2477 = vsyncpa [#allocation6], 1 }

</bundles_post_ra>
